<compile_context>
chip_gen: v7x
topology: tpu7x:2x2x1
jax: 0.10.0
libtpu: 0.0.40
codegen_flags: <defaults>
</compile_context>

<pallas_src>
import jax
import jax.numpy as jnp
from jax.experimental import pallas as pl
from jax.experimental.pallas import tpu as pltpu

IN_DIM = 28 * 28          # 784
HID = 512
OUT = 10
OUT_PAD = 128             # lane-dense padded output width
NEG_BIAS = -1e9           # padded logit lanes -> exp() underflows to exactly 0 in f32


def mlp_kernel(x_ref, w1_ref, b1_ref, w2_ref, b2_ref, w3_ref, b3_ref, o_ref):
    # layer 1: bf16 MXU matmul, f32 accumulate; bias+ReLU in f32; back to bf16 for next pass
    h1 = jnp.dot(x_ref[...], w1_ref[...], preferred_element_type=jnp.float32)
    h1 = jnp.maximum(h1 + b1_ref[...], 0.0).astype(jnp.bfloat16)
    # layer 2
    h2 = jnp.dot(h1, w2_ref[...], preferred_element_type=jnp.float32)
    h2 = jnp.maximum(h2 + b2_ref[...], 0.0).astype(jnp.bfloat16)
    # output layer (padded to 128 lanes; padded lanes carry bias = -1e9)
    logits = jnp.dot(h2, w3_ref[...], preferred_element_type=jnp.float32) + b3_ref[...]
    # numerically stable log_softmax over the last dim (full 128 lanes -> unmasked
    # reductions/stores; padded lanes contribute exp(...) == 0 so real lanes are exact)
    m = jnp.max(logits, axis=-1, keepdims=True)
    shifted = logits - m
    lse = jnp.log(jnp.sum(jnp.exp(shifted), axis=-1, keepdims=True))
    o_ref[...] = shifted - lse


def _round_up(x, m):
    return ((x + m - 1) // m) * m


def prepare_params(w1, b1, w2, b2, w3, b3):
    """One-time weight/bias cast + pad, hoisted out of the per-call path."""
    w1_p = jnp.asarray(w1, jnp.float32).astype(jnp.bfloat16)            # (784, 512)
    w2_p = jnp.asarray(w2, jnp.float32).astype(jnp.bfloat16)            # (512, 512)
    w3_p = jnp.pad(jnp.asarray(w3, jnp.float32),
                   ((0, 0), (0, OUT_PAD - OUT))).astype(jnp.bfloat16)   # (512, 128)
    b1_p = jnp.asarray(b1, jnp.float32).reshape(1, HID)
    b2_p = jnp.asarray(b2, jnp.float32).reshape(1, HID)
    b3_p = jnp.pad(jnp.asarray(b3, jnp.float32).reshape(1, OUT),
                   ((0, 0), (0, OUT_PAD - OUT)), constant_values=NEG_BIAS)
    return (w1_p, b1_p, w2_p, b2_p, w3_p, b3_p)


def _forward_prepared(x, w1_p, b1_p, w2_p, b2_p, w3_p, b3_p, *, batch_tile=512):
    """x: (B, 784) f32. Params already prepared (bf16 / padded). Returns (B, 10) f32."""
    B = x.shape[0]
    B_ceil = _round_up(max(B, 1), 128)
    bt = min(int(batch_tile), B_ceil)
    # v7x has 2 TensorCores: keep >= 2 grid steps whenever there is enough batch so the
    # "parallel" batch axis shards across both cores instead of idling one.
    if B_ceil >= 256:
        bt = min(bt, _round_up(pl.cdiv(B_ceil, 2), 128))
    B_pad = _round_up(B_ceil, bt)
    grid = (B_pad // bt,)

    # cast to bf16 BEFORE padding; only batch-pad (no K pad: full 784-wide block).
    x_p = jnp.pad(x.astype(jnp.bfloat16), ((0, B_pad - B), (0, 0)))

    itemsize = lambda a: a.size * a.dtype.itemsize
    cost = pl.CostEstimate(
        flops=2 * B_pad * (IN_DIM * HID + HID * HID + HID * OUT_PAD),
        transcendentals=B_pad * OUT_PAD,
        bytes_accessed=(itemsize(x_p) + itemsize(w1_p) + itemsize(w2_p) + itemsize(w3_p)
                        + itemsize(b1_p) + itemsize(b2_p) + itemsize(b3_p)
                        + B_pad * OUT_PAD * 4),
    )

    out_pad = pl.pallas_call(
        mlp_kernel,
        out_shape=jax.ShapeDtypeStruct((B_pad, OUT_PAD), jnp.float32),
        grid_spec=pltpu.PrefetchScalarGridSpec(
            num_scalar_prefetch=0,
            grid=grid,
            in_specs=[
                pl.BlockSpec((bt, IN_DIM), lambda i: (i, 0)),     # x tile (bf16, full 784 K)
                pl.BlockSpec((IN_DIM, HID), lambda i: (0, 0)),    # W1 (bf16, resident)
                pl.BlockSpec((1, HID), lambda i: (0, 0)),         # b1 (f32)
                pl.BlockSpec((HID, HID), lambda i: (0, 0)),       # W2 (bf16, resident)
                pl.BlockSpec((1, HID), lambda i: (0, 0)),         # b2 (f32)
                pl.BlockSpec((HID, OUT_PAD), lambda i: (0, 0)),   # W3 (bf16, resident)
                pl.BlockSpec((1, OUT_PAD), lambda i: (0, 0)),     # b3 (f32, pad lanes = -1e9)
            ],
            out_specs=pl.BlockSpec((bt, OUT_PAD), lambda i: (i, 0)),
        ),
        compiler_params=pltpu.CompilerParams(
            dimension_semantics=("parallel",),
        ),
        cost_estimate=cost,
    )(x_p, w1_p, b1_p, w2_p, b2_p, w3_p, b3_p)

    # Under jax.jit this slice fuses with the kernel's output; callers see exactly (B, 10).
    return out_pad[:B, :OUT]


def make_mnist_lr_net(w1, b1, w2, b2, w3, b3, *, batch_tile=512):
    """Factory: hoists param prep out of the hot path and jits the forward."""
    prepped = prepare_params(w1, b1, w2, b2, w3, b3)

    @jax.jit
    def forward(x):
        return _forward_prepared(x, *prepped, batch_tile=batch_tile)

    return forward


def mnist_lr_net_forward(x, w1, b1, w2, b2, w3, b3, *, batch_tile=512):
    """One-shot convenience path (prefer make_mnist_lr_net for repeated calls)."""
    prepped = prepare_params(w1, b1, w2, b2, w3, b3)
    return _forward_prepared(x, *prepped, batch_tile=batch_tile)


def init_params(key):
    """PyTorch nn.Linear-style init; W stored (out, in) then transposed to (in, out)."""
    def linear(key, fan_in, fan_out):
        kw, kb = jax.random.split(key)
        bound = 1.0 / jnp.sqrt(fan_in)
        w = jax.random.uniform(kw, (fan_out, fan_in), jnp.float32, -bound, bound)
        b = jax.random.uniform(kb, (fan_out,), jnp.float32, -bound, bound)
        return w.T, b.reshape(1, fan_out)

    k1, k2, k3 = jax.random.split(key, 3)
    w1, b1 = linear(k1, IN_DIM, HID)
    w2, b2 = linear(k2, HID, HID)
    w3, b3 = linear(k3, HID, OUT)
    return w1, b1, w2, b2, w3, b3


def reference_forward(x, w1, b1, w2, b2, w3, b3):
    """Pure-JAX reference using the same bf16-input / f32-accumulate numerics as the kernel."""
    f32 = jnp.float32
    xb = x.astype(jnp.bfloat16)
    h1 = jnp.maximum(jnp.dot(xb, w1.astype(jnp.bfloat16), preferred_element_type=f32) + b1, 0.0)
    h1 = h1.astype(jnp.bfloat16)
    h2 = jnp.maximum(jnp.dot(h1, w2.astype(jnp.bfloat16), preferred_element_type=f32) + b2, 0.0)
    h2 = h2.astype(jnp.bfloat16)
    logits = jnp.dot(h2, w3.astype(jnp.bfloat16), preferred_element_type=f32) + b3
    return jax.nn.log_softmax(logits, axis=1)


if __name__ == "__main__":
    key = jax.random.PRNGKey(0)
    k_params, k_x = jax.random.split(key)

    B = 8  # small test batch; wrapper pads it to one 128-row MXU tile
    x = jax.random.normal(k_x, (B, IN_DIM), jnp.float32)
    params = init_params(k_params)

    forward = make_mnist_lr_net(*params, batch_tile=512)
    out = jax.block_until_ready(forward(x))

    ref = reference_forward(x, *params)
    assert out.shape == (B, OUT), out.shape
    assert jnp.allclose(out, ref, atol=2e-3, rtol=2e-3), "mismatch vs pure-JAX reference"

    print("KERNEL_OK")
</pallas_src>

<mosaic_0001>
module attributes {stable_mosaic.version = 11 : i64} {
  func.func @mlp_kernel(%arg0: i32, %arg1: memref<128x784xbf16, #tpu.memory_space<vmem>>, %arg2: memref<784x512xbf16, #tpu.memory_space<vmem>>, %arg3: memref<1x512xf32, #tpu.memory_space<vmem>>, %arg4: memref<512x512xbf16, #tpu.memory_space<vmem>>, %arg5: memref<1x512xf32, #tpu.memory_space<vmem>>, %arg6: memref<512x128xbf16, #tpu.memory_space<vmem>>, %arg7: memref<1x128xf32, #tpu.memory_space<vmem>>, %arg8: memref<128x128xf32, #tpu.memory_space<vmem>>) attributes {dimension_semantics = [#tpu.dimension_semantics<parallel>], iteration_bounds = array<i64: 1>, scalar_prefetch = 0 : i64, scratch_operands = 0 : i64, tpu.core_type = #tpu.core_type<tc>, window_params = [{transform_indices = @transform_0, window_bounds = array<i64: 128, 784>}, {pipeline_mode = #tpu.pipeline_mode<synchronous>, transform_indices = @transform_1, window_bounds = array<i64: 784, 512>}, {pipeline_mode = #tpu.pipeline_mode<synchronous>, transform_indices = @transform_2, window_bounds = array<i64: 1, 512>}, {pipeline_mode = #tpu.pipeline_mode<synchronous>, transform_indices = @transform_3, window_bounds = array<i64: 512, 512>}, {pipeline_mode = #tpu.pipeline_mode<synchronous>, transform_indices = @transform_4, window_bounds = array<i64: 1, 512>}, {pipeline_mode = #tpu.pipeline_mode<synchronous>, transform_indices = @transform_5, window_bounds = array<i64: 512, 128>}, {pipeline_mode = #tpu.pipeline_mode<synchronous>, transform_indices = @transform_6, window_bounds = array<i64: 1, 128>}, {transform_indices = @transform_7, window_bounds = array<i64: 128, 128>}]} {
    %c0 = arith.constant 0 : index
    %c0_0 = arith.constant 0 : index
    %0 = vector.load %arg1[%c0, %c0_0] : memref<128x784xbf16, #tpu.memory_space<vmem>>, vector<128x784xbf16>
    %c0_1 = arith.constant 0 : index
    %c0_2 = arith.constant 0 : index
    %1 = vector.load %arg2[%c0_1, %c0_2] : memref<784x512xbf16, #tpu.memory_space<vmem>>, vector<784x512xbf16>
    %cst = arith.constant dense<0.000000e+00> : vector<128x512xf32>
    %2 = tpu.matmul %0, %1, %cst {dimension_numbers = #tpu.dot_dimension_numbers<[1], [0], [0], [1], [0, 0, 1, 1], [], []>} : vector<128x784xbf16>, vector<784x512xbf16>, vector<128x512xf32> -> vector<128x512xf32>
    %c0_3 = arith.constant 0 : index
    %c0_4 = arith.constant 0 : index
    %3 = vector.load %arg3[%c0_3, %c0_4] : memref<1x512xf32, #tpu.memory_space<vmem>>, vector<1x512xf32>
    %4 = vector.broadcast %3 : vector<1x512xf32> to vector<128x512xf32>
    %5 = arith.addf %2, %4 : vector<128x512xf32>
    %cst_5 = arith.constant 0.000000e+00 : f32
    %6 = vector.broadcast %cst_5 : f32 to vector<128x512xf32>
    %7 = arith.maximumf %5, %6 : vector<128x512xf32>
    %8 = arith.truncf %7 : vector<128x512xf32> to vector<128x512xbf16>
    %c0_6 = arith.constant 0 : index
    %c0_7 = arith.constant 0 : index
    %9 = vector.load %arg4[%c0_6, %c0_7] : memref<512x512xbf16, #tpu.memory_space<vmem>>, vector<512x512xbf16>
    %cst_8 = arith.constant dense<0.000000e+00> : vector<128x512xf32>
    %10 = tpu.matmul %8, %9, %cst_8 {dimension_numbers = #tpu.dot_dimension_numbers<[1], [0], [0], [1], [0, 0, 1, 1], [], []>} : vector<128x512xbf16>, vector<512x512xbf16>, vector<128x512xf32> -> vector<128x512xf32>
    %c0_9 = arith.constant 0 : index
    %c0_10 = arith.constant 0 : index
    %11 = vector.load %arg5[%c0_9, %c0_10] : memref<1x512xf32, #tpu.memory_space<vmem>>, vector<1x512xf32>
    %12 = vector.broadcast %11 : vector<1x512xf32> to vector<128x512xf32>
    %13 = arith.addf %10, %12 : vector<128x512xf32>
    %cst_11 = arith.constant 0.000000e+00 : f32
    %14 = vector.broadcast %cst_11 : f32 to vector<128x512xf32>
    %15 = arith.maximumf %13, %14 : vector<128x512xf32>
    %16 = arith.truncf %15 : vector<128x512xf32> to vector<128x512xbf16>
    %c0_12 = arith.constant 0 : index
    %c0_13 = arith.constant 0 : index
    %17 = vector.load %arg6[%c0_12, %c0_13] : memref<512x128xbf16, #tpu.memory_space<vmem>>, vector<512x128xbf16>
    %cst_14 = arith.constant dense<0.000000e+00> : vector<128x128xf32>
    %18 = tpu.matmul %16, %17, %cst_14 {dimension_numbers = #tpu.dot_dimension_numbers<[1], [0], [0], [1], [0, 0, 1, 1], [], []>} : vector<128x512xbf16>, vector<512x128xbf16>, vector<128x128xf32> -> vector<128x128xf32>
    %c0_15 = arith.constant 0 : index
    %c0_16 = arith.constant 0 : index
    %19 = vector.load %arg7[%c0_15, %c0_16] : memref<1x128xf32, #tpu.memory_space<vmem>>, vector<1x128xf32>
    %20 = vector.broadcast %19 : vector<1x128xf32> to vector<128x128xf32>
    %21 = arith.addf %18, %20 : vector<128x128xf32>
    %cst_17 = arith.constant dense<0xFF800000> : vector<128xf32>
    %22 = vector.multi_reduction <maximumf>, %21, %cst_17 [1] : vector<128x128xf32> to vector<128xf32>
    %23 = vector.shape_cast %22 : vector<128xf32> to vector<128x1xf32>
    %24 = vector.broadcast %23 : vector<128x1xf32> to vector<128x128xf32>
    %25 = arith.subf %21, %24 : vector<128x128xf32>
    %26 = math.exp %25 : vector<128x128xf32>
    %cst_18 = arith.constant dense<0.000000e+00> : vector<128xf32>
    %27 = vector.multi_reduction <add>, %26, %cst_18 [1] : vector<128x128xf32> to vector<128xf32>
    %28 = vector.shape_cast %27 : vector<128xf32> to vector<128x1xf32>
    %29 = math.log %28 : vector<128x1xf32>
    %30 = vector.broadcast %29 : vector<128x1xf32> to vector<128x128xf32>
    %31 = arith.subf %25, %30 : vector<128x128xf32>
    %c0_19 = arith.constant 0 : index
    %c0_20 = arith.constant 0 : index
    %32 = vector.load %arg8[%c0_19, %c0_20] : memref<128x128xf32, #tpu.memory_space<vmem>>, vector<128x128xf32>
    tpu.vector_store %arg8[%c0_19, %c0_20], %31 {strides = array<i32>} : memref<128x128xf32, #tpu.memory_space<vmem>>, vector<128x128xf32>,
    return
  }
  func.func @transform_0(%arg0: i32) -> (i32, i32) {
    %c0_i32 = arith.constant 0 : i32
    %c0_i32_0 = arith.constant 0 : i32
    return %arg0, %c0_i32 : i32, i32
  }
  func.func @transform_1(%arg0: i32) -> (i32, i32) {
    %c0_i32 = arith.constant 0 : i32
    %c0_i32_0 = arith.constant 0 : i32
    %c0_i32_1 = arith.constant 0 : i32
    return %c0_i32, %c0_i32_0 : i32, i32
  }
  func.func @transform_2(%arg0: i32) -> (i32, i32) {
    %c0_i32 = arith.constant 0 : i32
    %c0_i32_0 = arith.constant 0 : i32
    %c0_i32_1 = arith.constant 0 : i32
    return %c0_i32, %c0_i32_0 : i32, i32
  }
  func.func @transform_3(%arg0: i32) -> (i32, i32) {
    %c0_i32 = arith.constant 0 : i32
    %c0_i32_0 = arith.constant 0 : i32
    %c0_i32_1 = arith.constant 0 : i32
    return %c0_i32, %c0_i32_0 : i32, i32
  }
  func.func @transform_4(%arg0: i32) -> (i32, i32) {
    %c0_i32 = arith.constant 0 : i32
    %c0_i32_0 = arith.constant 0 : i32
    %c0_i32_1 = arith.constant 0 : i32
    return %c0_i32, %c0_i32_0 : i32, i32
  }
  func.func @transform_5(%arg0: i32) -> (i32, i32) {
    %c0_i32 = arith.constant 0 : i32
    %c0_i32_0 = arith.constant 0 : i32
    %c0_i32_1 = arith.constant 0 : i32
    return %c0_i32, %c0_i32_0 : i32, i32
  }
  func.func @transform_6(%arg0: i32) -> (i32, i32) {
    %c0_i32 = arith.constant 0 : i32
    %c0_i32_0 = arith.constant 0 : i32
    %c0_i32_1 = arith.constant 0 : i32
    return %c0_i32, %c0_i32_0 : i32, i32
  }
  func.func @transform_7(%arg0: i32) -> (i32, i32) {
    %c0_i32 = arith.constant 0 : i32
    %c0_i32_0 = arith.constant 0 : i32
    return %arg0, %c0_i32 : i32, i32
  }
}

</mosaic_0001>

<bundles_post_ra>
// kernel: forward.1
= control target key start
LH: loop header
LB: loop body
LE: loop exit
PB: predicated region body
PF: predicated region fallthrough
CT: control target
= control target key end

     0   :  { %vm1569_vm0 = vcmask 130048   ;;  %s7915_s1 = inlined_call_operand.vmem [shape: bf16[784,512], index: 1, kind: input, shape index: {}]   ;;  %s7916_s0 = inlined_call_operand.vmem [shape: bf16[128,784], index: 0, kind: input, shape index: {}]   ;;  %s7917_s3 = inlined_call_operand.vmem [shape: bf16[512,512], index: 3, kind: input, shape index: {}]   ;;  %s7918_s2 = inlined_call_operand.vmem [shape: f32[1,512], index: 2, kind: input, shape index: {}]   ;;  %s7919_s5 = inlined_call_operand.vmem [shape: bf16[512,128], index: 5, kind: input, shape index: {}]   ;;  %s7920_s4 = inlined_call_operand.vmem [shape: f32[1,512], index: 4, kind: input, shape index: {}]   ;;  %s7921_s6 = inlined_call_operand.vmem [shape: f32[1,128], index: 6, kind: input, shape index: {}]   ;;  %s7922_s7 = inlined_call_operand.vmem [shape: f32[128,128], index: 7, kind: output, shape index: {}]  }
   0x1   :  { %v5511_v0 = vld [vmem:[%s7915_s1 + $0x4] ss:$16 sps:$4 sm:$0xff]   ;;  %v5513_v1 = vld [vmem:[%s7915_s1 + $0xc] ss:$16 sps:$4 sm:$0xff]   ;;  %v5515_v2 = vld [vmem:[%s7915_s1] ss:$16 sps:$4 sm:$0xff]  }
   0x2   :  { %1594 = vmatprep.subr.bf16.mxu0 %v5511_v0  ;;  %v5516_v3 = vld [vmem:[%s7915_s1 + $0x8] ss:$16 sps:$4 sm:$0xff]   ;;  %2046 = vmatprep.subr.bf16.mxu1 %v5513_v1  ;;  %v5517_v4 = vld [vmem:[%s7915_s1 + $0x24] ss:$16 sps:$4 sm:$0xff]   ;;  %v5519_v5 = vld [vmem:[%s7915_s1 + $0x2c] ss:$16 sps:$4 sm:$0xff]  }
   0x3   :  { %1595 = vmatpush1.bf16.msra.mxu0 %v5515_v2  ;;  %2047 = vmatpush1.bf16.msra.mxu1 %v5516_v3  ;;  %v5521_v6 = vld [vmem:[%s7915_s1 + $0x20] ss:$16 sps:$4 sm:$0xff]   ;;  %v5522_v7 = vld [vmem:[%s7915_s1 + $0x28] ss:$16 sps:$4 sm:$0xff]   ;;  %v5523_v8 = vld [vmem:[%s7915_s1 + $0x44] ss:$16 sps:$4 sm:$0xff]  }
   0x4   :  { %1596 = vmatprep.subr.bf16.mxu0 %v5517_v4  ;;  %2048 = vmatprep.subr.bf16.mxu1 %v5519_v5  ;;  %v5525_v9 = vld [vmem:[%s7915_s1 + $0x4c] ss:$16 sps:$4 sm:$0xff]   ;;  %v5527_v10 = vld [vmem:[%s7915_s1 + $0x40] ss:$16 sps:$4 sm:$0xff]   ;;  %v5528_v11 = vld [vmem:[%s7915_s1 + $0x48] ss:$16 sps:$4 sm:$0xff]  }
   0x5   :  { %v5529_v12 = vld [vmem:[%s7915_s1 + $0x64] ss:$16 sps:$4 sm:$0xff]   ;;  %v5531_v13 = vld [vmem:[%s7915_s1 + $0x6c] ss:$16 sps:$4 sm:$0xff]   ;;  %v5533_v14 = vld [vmem:[%s7915_s1 + $0x60] ss:$16 sps:$4 sm:$0xff]  }
   0x6   :  { %v5534_v15 = vld [vmem:[%s7915_s1 + $0x68] ss:$16 sps:$4 sm:$0xff]   ;;  %v5535_v16 = vld [vmem:[%s7915_s1 + $0x84] ss:$16 sps:$4 sm:$0xff]   ;;  %v5537_v17 = vld [vmem:[%s7915_s1 + $0x8c] ss:$16 sps:$4 sm:$0xff]  }
   0x7   :  { %1597 = vmatpush1.bf16.msra.mxu0 %v5521_v6  ;;  %2049 = vmatpush1.bf16.msra.mxu1 %v5522_v7  ;;  %v5539_v18 = vld [vmem:[%s7915_s1 + $0x80] ss:$16 sps:$4 sm:$0xff]   ;;  %v5540_v19 = vld [vmem:[%s7915_s1 + $0x88] ss:$16 sps:$4 sm:$0xff]   ;;  %v5541_v20 = vld [vmem:[%s7915_s1 + $0xa4] ss:$16 sps:$4 sm:$0xff]  }
   0x8   :  { %1598 = vmatprep.subr.bf16.mxu0 %v5523_v8  ;;  %2050 = vmatprep.subr.bf16.mxu1 %v5525_v9  ;;  %v5543_v21 = vld [vmem:[%s7915_s1 + $0xac] ss:$16 sps:$4 sm:$0xff]   ;;  %v5545_v22 = vld [vmem:[%s7915_s1 + $0xa0] ss:$16 sps:$4 sm:$0xff]   ;;  %v5546_v23 = vld [vmem:[%s7915_s1 + $0xa8] ss:$16 sps:$4 sm:$0xff]  }
   0x9   :  { %v5547_v24 = vld [vmem:[%s7915_s1 + $0xc4] ss:$16 sps:$4 sm:$0xff]   ;;  %v5549_v25 = vld [vmem:[%s7915_s1 + $0xcc] ss:$16 sps:$4 sm:$0xff]   ;;  %v5551_v26 = vld [vmem:[%s7915_s1 + $0xc0] ss:$16 sps:$4 sm:$0xff]  }
   0xa   :  { %v5552_v27 = vld [vmem:[%s7915_s1 + $0xc8] ss:$16 sps:$4 sm:$0xff]   ;;  %v5553_v28 = vld [vmem:[%s7915_s1 + $0xe4] ss:$16 sps:$4 sm:$0xff]   ;;  %v5555_v29 = vld [vmem:[%s7915_s1 + $0xec] ss:$16 sps:$4 sm:$0xff]  }
   0xb   :  { %1599 = vmatpush1.bf16.msra.mxu0 %v5527_v10  ;;  %2051 = vmatpush1.bf16.msra.mxu1 %v5528_v11  ;;  %v5557_v30 = vld [vmem:[%s7915_s1 + $0xe0] ss:$16 sps:$4 sm:$0xff]   ;;  %v5558_v31 = vld [vmem:[%s7915_s1 + $0xe8] ss:$16 sps:$4 sm:$0xff]   ;;  %v5559_v32 = vld [vmem:[%s7915_s1 + $0x104] ss:$16 sps:$4 sm:$0xff]  }
   0xc   :  { %1600 = vmatprep.subr.bf16.mxu0 %v5529_v12  ;;  %2052 = vmatprep.subr.bf16.mxu1 %v5531_v13  ;;  %v5561_v33 = vld [vmem:[%s7915_s1 + $0x10c] ss:$16 sps:$4 sm:$0xff]   ;;  %v5563_v34 = vld [vmem:[%s7915_s1 + $0x100] ss:$16 sps:$4 sm:$0xff]   ;;  %v5564_v35 = vld [vmem:[%s7915_s1 + $0x108] ss:$16 sps:$4 sm:$0xff]  }
   0xd   :  { %v5565_v36 = vld [vmem:[%s7915_s1 + $0x124] ss:$16 sps:$4 sm:$0xff]   ;;  %v5567_v37 = vld [vmem:[%s7915_s1 + $0x12c] ss:$16 sps:$4 sm:$0xff]   ;;  %v5569_v38 = vld [vmem:[%s7915_s1 + $0x120] ss:$16 sps:$4 sm:$0xff]  }
   0xe   :  { %v5570_v39 = vld [vmem:[%s7915_s1 + $0x128] ss:$16 sps:$4 sm:$0xff]   ;;  %v5571_v40 = vld [vmem:[%s7915_s1 + $0x144] ss:$16 sps:$4 sm:$0xff]   ;;  %v5573_v41 = vld [vmem:[%s7915_s1 + $0x14c] ss:$16 sps:$4 sm:$0xff]  }
   0xf   :  { %1601 = vmatpush1.bf16.msra.mxu0 %v5533_v14  ;;  %2053 = vmatpush1.bf16.msra.mxu1 %v5534_v15  ;;  %v5575_v42 = vld [vmem:[%s7915_s1 + $0x140] ss:$16 sps:$4 sm:$0xff]   ;;  %v5576_v43 = vld [vmem:[%s7915_s1 + $0x148] ss:$16 sps:$4 sm:$0xff]   ;;  %v5577_v44 = vld [vmem:[%s7915_s1 + $0x164] ss:$16 sps:$4 sm:$0xff]  }
  0x10   :  { %1602 = vmatprep.subr.bf16.mxu0 %v5535_v16  ;;  %2054 = vmatprep.subr.bf16.mxu1 %v5537_v17  ;;  %v5579_v45 = vld [vmem:[%s7915_s1 + $0x16c] ss:$16 sps:$4 sm:$0xff]   ;;  %v5581_v46 = vld [vmem:[%s7915_s1 + $0x160] ss:$16 sps:$4 sm:$0xff]   ;;  %v5582_v47 = vld [vmem:[%s7915_s1 + $0x168] ss:$16 sps:$4 sm:$0xff]  }
  0x11   :  { %v5609_v48 = vld [vmem:[%s7916_s0 + $0x4] ss:$28 sps:$4 sm:$0xff]   ;;  %v5585_v50 = vld [vmem:[%s7915_s1 + $0x18c] ss:$16 sps:$4 sm:$0xff]   ;;  %v5588_v52 = vld [vmem:[%s7915_s1 + $0x188] ss:$16 sps:$4 sm:$0xff]  }
  0x12   :  { %v5583_v49 = vld [vmem:[%s7915_s1 + $0x184] ss:$16 sps:$4 sm:$0xff]   ;;  %1626 = vmatprep.mubr.bf16.mxu0 %v5609_v48  ;;  %2078 = vmatprep.mubr.bf16.mxu1 %v5609_v48  ;;  %v5587_v51 = vld [vmem:[%s7915_s1 + $0x180] ss:$16 sps:$4 sm:$0xff]   ;;  %v5591_v54 = vld [vmem:[%s7915_s1 + $0x1ac] ss:$16 sps:$4 sm:$0xff]  }
  0x13   :  { %1603 = vmatpush1.bf16.msra.mxu0 %v5539_v18  ;;  %2055 = vmatpush1.bf16.msra.mxu1 %v5540_v19  ;;  %v5589_v53 = vld [vmem:[%s7915_s1 + $0x1a4] ss:$16 sps:$4 sm:$0xff]   ;;  %v5593_v55 = vld [vmem:[%s7915_s1 + $0x1a0] ss:$16 sps:$4 sm:$0xff]   ;;  %v5594_v56 = vld [vmem:[%s7915_s1 + $0x1a8] ss:$16 sps:$4 sm:$0xff]  }
  0x14   :  { %1604 = vmatprep.subr.bf16.mxu0 %v5541_v20  ;;  %2056 = vmatprep.subr.bf16.mxu1 %v5543_v21  ;;  %v5595_v57 = vld [vmem:[%s7915_s1 + $0x1c4] ss:$16 sps:$4 sm:$0xff]   ;;  %v5597_v58 = vld [vmem:[%s7915_s1 + $0x1cc] ss:$16 sps:$4 sm:$0xff]   ;;  %v5599_v59 = vld [vmem:[%s7915_s1 + $0x1c0] ss:$16 sps:$4 sm:$0xff]  }
  0x15   :  { %v5600_v60 = vld [vmem:[%s7915_s1 + $0x1c8] ss:$16 sps:$4 sm:$0xff]   ;;  %v5601_v61 = vld [vmem:[%s7915_s1 + $0x1e4] ss:$16 sps:$4 sm:$0xff]   ;;  %v5603_v62 = vld [vmem:[%s7915_s1 + $0x1ec] ss:$16 sps:$4 sm:$0xff]  }
  0x16   :  { %v5605_v63 = vld [vmem:[%s7915_s1 + $0x1e0] ss:$16 sps:$4 sm:$0xff]   ;;  %v5606_v0 = vld [vmem:[%s7915_s1 + $0x1e8] ss:$16 sps:$4 sm:$0xff]   ;;  %v5612_v1 = vld [vmem:[%s7915_s1 + $0x204] ss:$16 sps:$4 sm:$0xff]  }
  0x17   :  { %1605 = vmatpush1.bf16.msra.mxu0 %v5545_v22  ;;  %2057 = vmatpush1.bf16.msra.mxu1 %v5546_v23  ;;  %v5615_v2 = vld [vmem:[%s7915_s1 + $0x20c] ss:$16 sps:$4 sm:$0xff]   ;;  %v5610_v4 = vld [vmem:[%s7915_s1 + $0x200] ss:$16 sps:$4 sm:$0xff]   ;;  %v5613_v5 = vld [vmem:[%s7915_s1 + $0x208] ss:$16 sps:$4 sm:$0xff]  }
  0x18   :  { %1606 = vmatprep.subr.bf16.mxu0 %v5547_v24  ;;  %2058 = vmatprep.subr.bf16.mxu1 %v5549_v25  ;;  %v5607_v3 = vld [vmem:[%s7916_s0] ss:$28 sps:$4 sm:$0xff]   ;;  %v5618_v6 = vld [vmem:[%s7915_s1 + $0x224] ss:$16 sps:$4 sm:$0xff]   ;;  %v5619_v10 = vld [vmem:[%s7915_s1 + $0x228] ss:$16 sps:$4 sm:$0xff]  }
  0x19   :  { %v5621_v7 = vld [vmem:[%s7915_s1 + $0x22c] ss:$16 sps:$4 sm:$0xff]   ;;  %v5616_v9 = vld [vmem:[%s7915_s1 + $0x220] ss:$16 sps:$4 sm:$0xff]   ;;  %v5627_v11 = vld [vmem:[%s7915_s1 + $0x244] ss:$16 sps:$4 sm:$0xff]  }
  0x1a   :  { %v5622_v8 = vld [vmem:[%s7916_s0 + $0x3c] ss:$28 sps:$4 sm:$0xff]   ;;  %v5625_v14 = vld [vmem:[%s7915_s1 + $0x240] ss:$16 sps:$4 sm:$0xff]   ;;  %v5633_v16 = vld [vmem:[%s7915_s1 + $0x264] ss:$16 sps:$4 sm:$0xff]  }
  0x1b   :  { %1607 = vmatpush1.bf16.msra.mxu0 %v5551_v26  ;;  %2059 = vmatpush1.bf16.msra.mxu1 %v5552_v27  ;;  %v5630_v12 = vld [vmem:[%s7915_s1 + $0x24c] ss:$16 sps:$4 sm:$0xff]   ;;  %v5624_v13 = vld [vmem:[%s7916_s0 + $0x38] ss:$28 sps:$4 sm:$0xff]   ;;  %v5631_v19 = vld [vmem:[%s7915_s1 + $0x260] ss:$16 sps:$4 sm:$0xff]  }
  0x1c   :  { %1608 = vmatprep.subr.bf16.mxu0 %v5553_v28  ;;  %2060 = vmatprep.subr.bf16.mxu1 %v5555_v29  ;;  %v5628_v15 = vld [vmem:[%s7915_s1 + $0x248] ss:$16 sps:$4 sm:$0xff]   ;;  %v5636_v17 = vld [vmem:[%s7915_s1 + $0x26c] ss:$16 sps:$4 sm:$0xff]   ;;  %v5637_v18 = vld [vmem:[%s7916_s0 + $0x74] ss:$28 sps:$4 sm:$0xff]  }
  0x1d   :  { %v5634_v20 = vld [vmem:[%s7915_s1 + $0x268] ss:$16 sps:$4 sm:$0xff]   ;;  %v5642_v21 = vld [vmem:[%s7915_s1 + $0x284] ss:$16 sps:$4 sm:$0xff]   ;;  %v5645_v22 = vld [vmem:[%s7915_s1 + $0x28c] ss:$16 sps:$4 sm:$0xff]  }
  0x1e   :  { %v5639_v23 = vld [vmem:[%s7916_s0 + $0x70] ss:$28 sps:$4 sm:$0xff]   ;;  %v5643_v25 = vld [vmem:[%s7915_s1 + $0x288] ss:$16 sps:$4 sm:$0xff]   ;;  %v5648_v26 = vld [vmem:[%s7915_s1 + $0x2a4] ss:$16 sps:$4 sm:$0xff]  }
  0x1f   :  { %1609 = vmatpush1.bf16.msra.mxu0 %v5557_v30  ;;  %2061 = vmatpush1.bf16.msra.mxu1 %v5558_v31  ;;  %v5640_v24 = vld [vmem:[%s7915_s1 + $0x280] ss:$16 sps:$4 sm:$0xff]   ;;  %v5651_v27 = vld [vmem:[%s7915_s1 + $0x2ac] ss:$16 sps:$4 sm:$0xff]   ;;  %v5649_v30 = vld [vmem:[%s7915_s1 + $0x2a8] ss:$16 sps:$4 sm:$0xff]  }
  0x20   :  { %1610 = vmatprep.subr.bf16.mxu0 %v5559_v32  ;;  %2062 = vmatprep.subr.bf16.mxu1 %v5561_v33  ;;  %v5652_v28 = vld [vmem:[%s7916_s0 + $0xac] ss:$28 sps:$4 sm:$0xff]   ;;  %v5646_v29 = vld [vmem:[%s7915_s1 + $0x2a0] ss:$16 sps:$4 sm:$0xff]   ;;  %v5657_v31 = vld [vmem:[%s7915_s1 + $0x2c4] ss:$16 sps:$4 sm:$0xff]  }
  0x21   :  { %v5660_v32 = vld [vmem:[%s7915_s1 + $0x2cc] ss:$16 sps:$4 sm:$0xff]   ;;  %v5654_v33 = vld [vmem:[%s7916_s0 + $0xa8] ss:$28 sps:$4 sm:$0xff]  }
  0x22   :  { %v5682_v48 = vld [vmem:[%s7916_s0 + $0x11c] ss:$28 sps:$4 sm:$0xff]  }
  0x23   :  { %1611 = vmatpush1.bf16.msra.mxu0 %v5563_v34  ;;  %2063 = vmatpush1.bf16.msra.mxu1 %v5564_v35  ;;  %v5655_v34 = vld [vmem:[%s7915_s1 + $0x2c0] ss:$16 sps:$4 sm:$0xff]   ;;  %v5658_v35 = vld [vmem:[%s7915_s1 + $0x2c8] ss:$16 sps:$4 sm:$0xff]  }
  0x24   :  { %1612 = vmatprep.subr.bf16.mxu0 %v5565_v36  ;;  %2064 = vmatprep.subr.bf16.mxu1 %v5567_v37  ;;  %v5663_v36 = vld [vmem:[%s7915_s1 + $0x2e4] ss:$16 sps:$4 sm:$0xff]   ;;  %v5666_v37 = vld [vmem:[%s7915_s1 + $0x2ec] ss:$16 sps:$4 sm:$0xff]  }
  0x27   :  { %1613 = vmatpush1.bf16.msra.mxu0 %v5569_v38  ;;  %2065 = vmatpush1.bf16.msra.mxu1 %v5570_v39  ;;  %v5667_v38 = vld [vmem:[%s7916_s0 + $0xe4] ss:$28 sps:$4 sm:$0xff]  }
  0x28   :  { %1614 = vmatprep.subr.bf16.mxu0 %v5571_v40  ;;  %2066 = vmatprep.subr.bf16.mxu1 %v5573_v41  ;;  %v5661_v39 = vld [vmem:[%s7915_s1 + $0x2e0] ss:$16 sps:$4 sm:$0xff]   ;;  %v5664_v40 = vld [vmem:[%s7915_s1 + $0x2e8] ss:$16 sps:$4 sm:$0xff]   ;;  %v5672_v41 = vld [vmem:[%s7915_s1 + $0x304] ss:$16 sps:$4 sm:$0xff]  }
  0x2b   :  { %1615 = vmatpush1.bf16.msra.mxu0 %v5575_v42  ;;  %2067 = vmatpush1.bf16.msra.mxu1 %v5576_v43  ;;  %v5675_v42 = vld [vmem:[%s7915_s1 + $0x30c] ss:$16 sps:$4 sm:$0xff]  }
  0x2c   :  { %1616 = vmatprep.subr.bf16.mxu0 %v5577_v44  ;;  %2068 = vmatprep.subr.bf16.mxu1 %v5579_v45  ;;  %v5669_v43 = vld [vmem:[%s7916_s0 + $0xe0] ss:$28 sps:$4 sm:$0xff]   ;;  %v5673_v45 = vld [vmem:[%s7915_s1 + $0x308] ss:$16 sps:$4 sm:$0xff]  }
  0x2d   :  { %v5670_v44 = vld [vmem:[%s7915_s1 + $0x300] ss:$16 sps:$4 sm:$0xff]  }
  0x2f   :  { %1617 = vmatpush1.bf16.msra.mxu0 %v5581_v46  ;;  %2069 = vmatpush1.bf16.msra.mxu1 %v5582_v47  ;;  %v5678_v46 = vld [vmem:[%s7915_s1 + $0x324] ss:$16 sps:$4 sm:$0xff]   ;;  %v5681_v47 = vld [vmem:[%s7915_s1 + $0x32c] ss:$16 sps:$4 sm:$0xff]  }
  0x30   :  { %1618 = vmatprep.subr.bf16.mxu0 %v5583_v49  ;;  %2070 = vmatprep.subr.bf16.mxu1 %v5585_v50  ;;  %v5676_v49 = vld [vmem:[%s7915_s1 + $0x320] ss:$16 sps:$4 sm:$0xff]   ;;  %v5679_v50 = vld [vmem:[%s7915_s1 + $0x328] ss:$16 sps:$4 sm:$0xff]  }
  0x33   :  { %1619 = vmatpush1.bf16.msra.mxu0 %v5587_v51  ;;  %2071 = vmatpush1.bf16.msra.mxu1 %v5588_v52  ;;  %v5687_v51 = vld [vmem:[%s7915_s1 + $0x344] ss:$16 sps:$4 sm:$0xff]   ;;  %v5690_v52 = vld [vmem:[%s7915_s1 + $0x34c] ss:$16 sps:$4 sm:$0xff]  }
  0x34   :  { %1620 = vmatprep.subr.bf16.mxu0 %v5589_v53  ;;  %2072 = vmatprep.subr.bf16.mxu1 %v5591_v54  ;;  %v5684_v53 = vld [vmem:[%s7916_s0 + $0x118] ss:$28 sps:$4 sm:$0xff]   ;;  %v5685_v54 = vld [vmem:[%s7915_s1 + $0x340] ss:$16 sps:$4 sm:$0xff]  }
  0x37   :  { %1621 = vmatpush1.bf16.msra.mxu0 %v5593_v55  ;;  %2073 = vmatpush1.bf16.msra.mxu1 %v5594_v56  ;;  %v5688_v55 = vld [vmem:[%s7915_s1 + $0x348] ss:$16 sps:$4 sm:$0xff]   ;;  %v5693_v56 = vld [vmem:[%s7915_s1 + $0x364] ss:$16 sps:$4 sm:$0xff]  }
  0x38   :  { %1622 = vmatprep.subr.bf16.mxu0 %v5595_v57  ;;  %2074 = vmatprep.subr.bf16.mxu1 %v5597_v58  ;;  %v5696_v57 = vld [vmem:[%s7915_s1 + $0x36c] ss:$16 sps:$4 sm:$0xff]   ;;  %v5697_v58 = vld [vmem:[%s7916_s0 + $0x154] ss:$28 sps:$4 sm:$0xff]  }
  0x3b   :  { %1623 = vmatpush1.bf16.msra.mxu0 %v5599_v59  ;;  %2075 = vmatpush1.bf16.msra.mxu1 %v5600_v60  ;;  %v5691_v59 = vld [vmem:[%s7915_s1 + $0x360] ss:$16 sps:$4 sm:$0xff]   ;;  %v5694_v60 = vld [vmem:[%s7915_s1 + $0x368] ss:$16 sps:$4 sm:$0xff]  }
  0x3c   :  { %1624 = vmatprep.subr.bf16.mxu0 %v5601_v61  ;;  %2076 = vmatprep.subr.bf16.mxu1 %v5603_v62  ;;  %v5702_v61 = vld [vmem:[%s7915_s1 + $0x384] ss:$16 sps:$4 sm:$0xff]   ;;  %v5705_v62 = vld [vmem:[%s7915_s1 + $0x38c] ss:$16 sps:$4 sm:$0xff]  }
  0x3f   :  { %1625 = vmatpush1.bf16.msra.mxu0 %v5605_v63  ;;  %2077 = vmatpush1.bf16.msra.mxu1 %v5606_v0  ;;  %v5699_v63 = vld [vmem:[%s7916_s0 + $0x150] ss:$28 sps:$4 sm:$0xff]  }
  0x40   :  { %1707 = vmatprep.subr.bf16.mxu0 %v5612_v1  ;;  %2159 = vmatprep.subr.bf16.mxu1 %v5615_v2  ;;  %v5700_v0 = vld [vmem:[%s7915_s1 + $0x380] ss:$16 sps:$4 sm:$0xff]   ;;  %v5703_v1 = vld [vmem:[%s7915_s1 + $0x388] ss:$16 sps:$4 sm:$0xff]   ;;  %v5708_v2 = vld [vmem:[%s7915_s1 + $0x3a4] ss:$16 sps:$4 sm:$0xff]  }
  0x42   :  { %1627 = vmatmul.mubr.bf16.vlgmr.msra.gmra.mrb[0].mxu0 %v5607_v3  ;;  %2079 = vmatmul.mubr.bf16.vlgmr.msra.gmra.mrb[0].mxu1 %v5607_v3  ;;  %v5711_v3 = vld [vmem:[%s7915_s1 + $0x3ac] ss:$16 sps:$4 sm:$0xff]  }
  0x43   :  { %1708 = vmatpush1.bf16.msra.mxu0 %v5610_v4  ;;  %2160 = vmatpush1.bf16.msra.mxu1 %v5613_v5  ;;  %v5712_v4 = vld [vmem:[%s7916_s0 + $0x18c] ss:$28 sps:$4 sm:$0xff]   ;;  %v5706_v5 = vld [vmem:[%s7915_s1 + $0x3a0] ss:$16 sps:$4 sm:$0xff]  }
  0x44   :  { %1709 = vmatprep.subr.bf16.mxu0 %v5618_v6  ;;  %2161 = vmatprep.subr.bf16.mxu1 %v5621_v7  ;;  %v5709_v6 = vld [vmem:[%s7915_s1 + $0x3a8] ss:$16 sps:$4 sm:$0xff]   ;;  %v5717_v7 = vld [vmem:[%s7915_s1 + $0x3c4] ss:$16 sps:$4 sm:$0xff]  }
  0x45   :  { %1636 = vmatprep.mubr.bf16.mxu0 %v5622_v8  ;;  %2088 = vmatprep.mubr.bf16.mxu1 %v5622_v8  ;;  %v5720_v8 = vld [vmem:[%s7915_s1 + $0x3cc] ss:$16 sps:$4 sm:$0xff]  }
  0x47   :  { %1710 = vmatpush1.bf16.msra.mxu0 %v5616_v9  ;;  %2162 = vmatpush1.bf16.msra.mxu1 %v5619_v10  ;;  %v5714_v9 = vld [vmem:[%s7916_s0 + $0x188] ss:$28 sps:$4 sm:$0xff]   ;;  %v5715_v10 = vld [vmem:[%s7915_s1 + $0x3c0] ss:$16 sps:$4 sm:$0xff]  }
  0x48   :  { %1711 = vmatprep.subr.bf16.mxu0 %v5627_v11  ;;  %2163 = vmatprep.subr.bf16.mxu1 %v5630_v12  ;;  %v5718_v11 = vld [vmem:[%s7915_s1 + $0x3c8] ss:$16 sps:$4 sm:$0xff]   ;;  %v5723_v12 = vld [vmem:[%s7915_s1 + $0x3e4] ss:$16 sps:$4 sm:$0xff]  }
  0x4a   :  { %1637 = vmatmul.mubr.bf16.gmra.mrb[4].mxu0 %v5624_v13  ;;  %2089 = vmatmul.mubr.bf16.gmra.mrb[4].mxu1 %v5624_v13  ;;  %v5726_v13 = vld [vmem:[%s7915_s1 + $0x3ec] ss:$16 sps:$4 sm:$0xff]  }
  0x4b   :  { %1712 = vmatpush1.bf16.msra.mxu0 %v5625_v14  ;;  %2164 = vmatpush1.bf16.msra.mxu1 %v5628_v15  ;;  %v5729_v14 = vld [vmem:[%s7916_s0 + $0xc] ss:$28 sps:$4 sm:$0xff]   ;;  %v5721_v15 = vld [vmem:[%s7915_s1 + $0x3e0] ss:$16 sps:$4 sm:$0xff]  }
  0x4c   :  { %1713 = vmatprep.subr.bf16.mxu0 %v5633_v16  ;;  %2165 = vmatprep.subr.bf16.mxu1 %v5636_v17  ;;  %v5724_v16 = vld [vmem:[%s7915_s1 + $0x3e8] ss:$16 sps:$4 sm:$0xff]   ;;  %v5732_v17 = vld [vmem:[%s7915_s1 + $0x404] ss:$16 sps:$4 sm:$0xff]  }
  0x4d   :  { %1646 = vmatprep.mubr.bf16.mxu0 %v5637_v18  ;;  %2098 = vmatprep.mubr.bf16.mxu1 %v5637_v18  ;;  %v5735_v18 = vld [vmem:[%s7915_s1 + $0x40c] ss:$16 sps:$4 sm:$0xff]  }
  0x4f   :  { %1714 = vmatpush1.bf16.msra.mxu0 %v5631_v19  ;;  %2166 = vmatpush1.bf16.msra.mxu1 %v5634_v20  ;;  %v5727_v19 = vld [vmem:[%s7916_s0 + $0x8] ss:$28 sps:$4 sm:$0xff]   ;;  %v5730_v20 = vld [vmem:[%s7915_s1 + $0x400] ss:$16 sps:$4 sm:$0xff]  }
  0x50   :  { %1715 = vmatprep.subr.bf16.mxu0 %v5642_v21  ;;  %2167 = vmatprep.subr.bf16.mxu1 %v5645_v22  ;;  %v5733_v21 = vld [vmem:[%s7915_s1 + $0x408] ss:$16 sps:$4 sm:$0xff]   ;;  %v5738_v22 = vld [vmem:[%s7915_s1 + $0x424] ss:$16 sps:$4 sm:$0xff]  }
  0x52   :  { %1647 = vmatmul.mubr.bf16.gmra.mrb[8].mxu0 %v5639_v23  ;;  %2099 = vmatmul.mubr.bf16.gmra.mrb[8].mxu1 %v5639_v23  ;;  %v5741_v23 = vld [vmem:[%s7915_s1 + $0x42c] ss:$16 sps:$4 sm:$0xff]  }
  0x53   :  { %1716 = vmatpush1.bf16.msra.mxu0 %v5640_v24  ;;  %2168 = vmatpush1.bf16.msra.mxu1 %v5643_v25  ;;  %v5742_v24 = vld [vmem:[%s7916_s0 + $0x44] ss:$28 sps:$4 sm:$0xff]  }
  0x54   :  { %1717 = vmatprep.subr.bf16.mxu0 %v5648_v26  ;;  %2169 = vmatprep.subr.bf16.mxu1 %v5651_v27  ;;  %v5736_v25 = vld [vmem:[%s7915_s1 + $0x420] ss:$16 sps:$4 sm:$0xff]   ;;  %v5739_v26 = vld [vmem:[%s7915_s1 + $0x428] ss:$16 sps:$4 sm:$0xff]   ;;  %v5747_v27 = vld [vmem:[%s7915_s1 + $0x444] ss:$16 sps:$4 sm:$0xff]  }
  0x55   :  { %1656 = vmatprep.mubr.bf16.mxu0 %v5652_v28  ;;  %2108 = vmatprep.mubr.bf16.mxu1 %v5652_v28  ;;  %v5750_v28 = vld [vmem:[%s7915_s1 + $0x44c] ss:$16 sps:$4 sm:$0xff]  }
  0x57   :  { %1718 = vmatpush1.bf16.msra.mxu0 %v5646_v29  ;;  %2170 = vmatpush1.bf16.msra.mxu1 %v5649_v30  ;;  %v5744_v29 = vld [vmem:[%s7916_s0 + $0x40] ss:$28 sps:$4 sm:$0xff]  }
  0x58   :  { %1719 = vmatprep.subr.bf16.mxu0 %v5657_v31  ;;  %2171 = vmatprep.subr.bf16.mxu1 %v5660_v32  ;;  %v5745_v30 = vld [vmem:[%s7915_s1 + $0x440] ss:$16 sps:$4 sm:$0xff]   ;;  %v5748_v31 = vld [vmem:[%s7915_s1 + $0x448] ss:$16 sps:$4 sm:$0xff]   ;;  %v5753_v32 = vld [vmem:[%s7915_s1 + $0x464] ss:$16 sps:$4 sm:$0xff]  }
  0x5a   :  { %1657 = vmatmul.mubr.bf16.gmra.mrb[12].mxu0 %v5654_v33  ;;  %2109 = vmatmul.mubr.bf16.gmra.mrb[12].mxu1 %v5654_v33  ;;  %v5756_v33 = vld [vmem:[%s7915_s1 + $0x46c] ss:$16 sps:$4 sm:$0xff]  }
  0x5b   :  { %1720 = vmatpush1.bf16.msra.mxu0 %v5655_v34  ;;  %2172 = vmatpush1.bf16.msra.mxu1 %v5658_v35  ;;  %v5757_v34 = vld [vmem:[%s7916_s0 + $0x7c] ss:$28 sps:$4 sm:$0xff]   ;;  %v5751_v35 = vld [vmem:[%s7915_s1 + $0x460] ss:$16 sps:$4 sm:$0xff]  }
  0x5c   :  { %1721 = vmatprep.subr.bf16.mxu0 %v5663_v36  ;;  %2173 = vmatprep.subr.bf16.mxu1 %v5666_v37  ;;  %v5754_v36 = vld [vmem:[%s7915_s1 + $0x468] ss:$16 sps:$4 sm:$0xff]   ;;  %v5762_v37 = vld [vmem:[%s7915_s1 + $0x484] ss:$16 sps:$4 sm:$0xff]  }
  0x5d   :  { %1666 = vmatprep.mubr.bf16.mxu0 %v5667_v38  ;;  %2118 = vmatprep.mubr.bf16.mxu1 %v5667_v38  ;;  %v5765_v38 = vld [vmem:[%s7915_s1 + $0x48c] ss:$16 sps:$4 sm:$0xff]  }
  0x5f   :  { %1722 = vmatpush1.bf16.msra.mxu0 %v5661_v39  ;;  %2174 = vmatpush1.bf16.msra.mxu1 %v5664_v40  ;;  %v5759_v39 = vld [vmem:[%s7916_s0 + $0x78] ss:$28 sps:$4 sm:$0xff]   ;;  %v5760_v40 = vld [vmem:[%s7915_s1 + $0x480] ss:$16 sps:$4 sm:$0xff]  }
  0x60   :  { %1723 = vmatprep.subr.bf16.mxu0 %v5672_v41  ;;  %2175 = vmatprep.subr.bf16.mxu1 %v5675_v42  ;;  %v5763_v41 = vld [vmem:[%s7915_s1 + $0x488] ss:$16 sps:$4 sm:$0xff]   ;;  %v5768_v42 = vld [vmem:[%s7915_s1 + $0x4a4] ss:$16 sps:$4 sm:$0xff]  }
  0x62   :  { %1667 = vmatmul.mubr.bf16.gmra.mrb[16].mxu0 %v5669_v43  ;;  %2119 = vmatmul.mubr.bf16.gmra.mrb[16].mxu1 %v5669_v43  ;;  %v5771_v43 = vld [vmem:[%s7915_s1 + $0x4ac] ss:$16 sps:$4 sm:$0xff]  }
  0x63   :  { %1724 = vmatpush1.bf16.msra.mxu0 %v5670_v44  ;;  %2176 = vmatpush1.bf16.msra.mxu1 %v5673_v45  ;;  %v5772_v44 = vld [vmem:[%s7916_s0 + $0xb4] ss:$28 sps:$4 sm:$0xff]  }
  0x64   :  { %1725 = vmatprep.subr.bf16.mxu0 %v5678_v46  ;;  %2177 = vmatprep.subr.bf16.mxu1 %v5681_v47  ;;  %v5766_v45 = vld [vmem:[%s7915_s1 + $0x4a0] ss:$16 sps:$4 sm:$0xff]   ;;  %v5769_v46 = vld [vmem:[%s7915_s1 + $0x4a8] ss:$16 sps:$4 sm:$0xff]   ;;  %v5777_v47 = vld [vmem:[%s7915_s1 + $0x4c4] ss:$16 sps:$4 sm:$0xff]  }
  0x65   :  { %1676 = vmatprep.mubr.bf16.mxu0 %v5682_v48  ;;  %2128 = vmatprep.mubr.bf16.mxu1 %v5682_v48  ;;  %v5780_v48 = vld [vmem:[%s7915_s1 + $0x4cc] ss:$16 sps:$4 sm:$0xff]  }
  0x67   :  { %1726 = vmatpush1.bf16.msra.mxu0 %v5676_v49  ;;  %2178 = vmatpush1.bf16.msra.mxu1 %v5679_v50  ;;  %v5774_v49 = vld [vmem:[%s7916_s0 + $0xb0] ss:$28 sps:$4 sm:$0xff]  }
  0x68   :  { %1727 = vmatprep.subr.bf16.mxu0 %v5687_v51  ;;  %2179 = vmatprep.subr.bf16.mxu1 %v5690_v52  ;;  %v5775_v50 = vld [vmem:[%s7915_s1 + $0x4c0] ss:$16 sps:$4 sm:$0xff]   ;;  %v5778_v51 = vld [vmem:[%s7915_s1 + $0x4c8] ss:$16 sps:$4 sm:$0xff]   ;;  %v5783_v52 = vld [vmem:[%s7915_s1 + $0x4e4] ss:$16 sps:$4 sm:$0xff]  }
  0x6a   :  { %1677 = vmatmul.mubr.bf16.gmra.mrb[20].mxu0 %v5684_v53  ;;  %2129 = vmatmul.mubr.bf16.gmra.mrb[20].mxu1 %v5684_v53  ;;  %v5786_v53 = vld [vmem:[%s7915_s1 + $0x4ec] ss:$16 sps:$4 sm:$0xff]  }
  0x6b   :  { %1728 = vmatpush1.bf16.msra.mxu0 %v5685_v54  ;;  %2180 = vmatpush1.bf16.msra.mxu1 %v5688_v55  ;;  %v5787_v54 = vld [vmem:[%s7916_s0 + $0xec] ss:$28 sps:$4 sm:$0xff]   ;;  %v5781_v55 = vld [vmem:[%s7915_s1 + $0x4e0] ss:$16 sps:$4 sm:$0xff]  }
  0x6c   :  { %1729 = vmatprep.subr.bf16.mxu0 %v5693_v56  ;;  %2181 = vmatprep.subr.bf16.mxu1 %v5696_v57  ;;  %v5784_v56 = vld [vmem:[%s7915_s1 + $0x4e8] ss:$16 sps:$4 sm:$0xff]   ;;  %v5792_v57 = vld [vmem:[%s7915_s1 + $0x504] ss:$16 sps:$4 sm:$0xff]  }
  0x6d   :  { %1686 = vmatprep.mubr.bf16.mxu0 %v5697_v58  ;;  %2138 = vmatprep.mubr.bf16.mxu1 %v5697_v58  ;;  %v5795_v58 = vld [vmem:[%s7915_s1 + $0x50c] ss:$16 sps:$4 sm:$0xff]  }
  0x6f   :  { %1730 = vmatpush1.bf16.msra.mxu0 %v5691_v59  ;;  %2182 = vmatpush1.bf16.msra.mxu1 %v5694_v60  ;;  %v5789_v59 = vld [vmem:[%s7916_s0 + $0xe8] ss:$28 sps:$4 sm:$0xff]   ;;  %v5790_v60 = vld [vmem:[%s7915_s1 + $0x500] ss:$16 sps:$4 sm:$0xff]  }
  0x70   :  { %1731 = vmatprep.subr.bf16.mxu0 %v5702_v61  ;;  %2183 = vmatprep.subr.bf16.mxu1 %v5705_v62  ;;  %v5793_v61 = vld [vmem:[%s7915_s1 + $0x508] ss:$16 sps:$4 sm:$0xff]   ;;  %v5798_v62 = vld [vmem:[%s7915_s1 + $0x524] ss:$16 sps:$4 sm:$0xff]  }
  0x72   :  { %1687 = vmatmul.mubr.bf16.gmra.mrb[24].mxu0 %v5699_v63  ;;  %2139 = vmatmul.mubr.bf16.gmra.mrb[24].mxu1 %v5699_v63  ;;  %v5801_v63 = vld [vmem:[%s7915_s1 + $0x52c] ss:$16 sps:$4 sm:$0xff]  }
  0x73   :  { %1732 = vmatpush1.bf16.msra.mxu0 %v5700_v0  ;;  %2184 = vmatpush1.bf16.msra.mxu1 %v5703_v1  ;;  %v5796_v0 = vld [vmem:[%s7915_s1 + $0x520] ss:$16 sps:$4 sm:$0xff]  }
  0x74   :  { %1733 = vmatprep.subr.bf16.mxu0 %v5708_v2  ;;  %2185 = vmatprep.subr.bf16.mxu1 %v5711_v3  ;;  %v5802_v1 = vld [vmem:[%s7916_s0 + $0x124] ss:$28 sps:$4 sm:$0xff]   ;;  %v5799_v2 = vld [vmem:[%s7915_s1 + $0x528] ss:$16 sps:$4 sm:$0xff]  }
  0x75   :  { %1696 = vmatprep.mubr.bf16.mxu0 %v5712_v4  ;;  %2148 = vmatprep.mubr.bf16.mxu1 %v5712_v4  ;;  %v5807_v3 = vld [vmem:[%s7915_s1 + $0x544] ss:$16 sps:$4 sm:$0xff]   ;;  %v5804_v4 = vld [vmem:[%s7916_s0 + $0x120] ss:$28 sps:$4 sm:$0xff]  }
  0x77   :  { %1734 = vmatpush1.bf16.msra.mxu0 %v5706_v5  ;;  %2186 = vmatpush1.bf16.msra.mxu1 %v5709_v6  ;;  %v5810_v5 = vld [vmem:[%s7915_s1 + $0x54c] ss:$16 sps:$4 sm:$0xff]   ;;  %v5805_v6 = vld [vmem:[%s7915_s1 + $0x540] ss:$16 sps:$4 sm:$0xff]  }
  0x78   :  { %1735 = vmatprep.subr.bf16.mxu0 %v5717_v7  ;;  %2187 = vmatprep.subr.bf16.mxu1 %v5720_v8  ;;  %v5808_v7 = vld [vmem:[%s7915_s1 + $0x548] ss:$16 sps:$4 sm:$0xff]   ;;  %v5813_v8 = vld [vmem:[%s7915_s1 + $0x564] ss:$16 sps:$4 sm:$0xff]  }
  0x7a   :  { %1697 = vmatmul.mubr.bf16.gmra.mrb[28].mxu0 %v5714_v9  ;;  %2149 = vmatmul.mubr.bf16.gmra.mrb[28].mxu1 %v5714_v9  ;;  %v5816_v9 = vld [vmem:[%s7915_s1 + $0x56c] ss:$16 sps:$4 sm:$0xff]  }
  0x7b   :  { %1736 = vmatpush1.bf16.msra.mxu0 %v5715_v10  ;;  %2188 = vmatpush1.bf16.msra.mxu1 %v5718_v11  ;;  %v5817_v10 = vld [vmem:[%s7916_s0 + $0x15c] ss:$28 sps:$4 sm:$0xff]   ;;  %v5811_v11 = vld [vmem:[%s7915_s1 + $0x560] ss:$16 sps:$4 sm:$0xff]  }
  0x7c   :  { %1737 = vmatprep.subr.bf16.mxu0 %v5723_v12  ;;  %2189 = vmatprep.subr.bf16.mxu1 %v5726_v13  ;;  %v5814_v12 = vld [vmem:[%s7915_s1 + $0x568] ss:$16 sps:$4 sm:$0xff]   ;;  %v5822_v13 = vld [vmem:[%s7915_s1 + $0x584] ss:$16 sps:$4 sm:$0xff]  }
  0x7d   :  { %1739 = vmatprep.mubr.bf16.mxu0 %v5729_v14  ;;  %2191 = vmatprep.mubr.bf16.mxu1 %v5729_v14  ;;  %v5825_v14 = vld [vmem:[%s7915_s1 + $0x58c] ss:$16 sps:$4 sm:$0xff]  }
  0x7f   :  { %1738 = vmatpush1.bf16.msra.mxu0 %v5721_v15  ;;  %2190 = vmatpush1.bf16.msra.mxu1 %v5724_v16  ;;  %v5819_v15 = vld [vmem:[%s7916_s0 + $0x158] ss:$28 sps:$4 sm:$0xff]   ;;  %v5820_v16 = vld [vmem:[%s7915_s1 + $0x580] ss:$16 sps:$4 sm:$0xff]  }
  0x80   :  { %1820 = vmatprep.subr.bf16.mxu0 %v5732_v17  ;;  %2272 = vmatprep.subr.bf16.mxu1 %v5735_v18  ;;  %v5823_v17 = vld [vmem:[%s7915_s1 + $0x588] ss:$16 sps:$4 sm:$0xff]   ;;  %v5828_v18 = vld [vmem:[%s7915_s1 + $0x5a4] ss:$16 sps:$4 sm:$0xff]  }
  0x82   :  { %1740 = vmatmul.mubr.bf16.vlgmr.msra.gmra.mrb[0].mxu0 %v5727_v19  ;;  %2192 = vmatmul.mubr.bf16.vlgmr.msra.gmra.mrb[0].mxu1 %v5727_v19  ;;  %v5831_v19 = vld [vmem:[%s7915_s1 + $0x5ac] ss:$16 sps:$4 sm:$0xff]  }
  0x83   :  { %1821 = vmatpush1.bf16.msra.mxu0 %v5730_v20  ;;  %2273 = vmatpush1.bf16.msra.mxu1 %v5733_v21  ;;  %v5832_v20 = vld [vmem:[%s7916_s0 + $0x194] ss:$28 sps:$4 sm:$0xff]  }
  0x84   :  { %1822 = vmatprep.subr.bf16.mxu0 %v5738_v22  ;;  %2274 = vmatprep.subr.bf16.mxu1 %v5741_v23  ;;  %v5826_v21 = vld [vmem:[%s7915_s1 + $0x5a0] ss:$16 sps:$4 sm:$0xff]   ;;  %v5829_v22 = vld [vmem:[%s7915_s1 + $0x5a8] ss:$16 sps:$4 sm:$0xff]   ;;  %v5837_v23 = vld [vmem:[%s7915_s1 + $0x5c4] ss:$16 sps:$4 sm:$0xff]  }
  0x85   :  { %1749 = vmatprep.mubr.bf16.mxu0 %v5742_v24  ;;  %2201 = vmatprep.mubr.bf16.mxu1 %v5742_v24  ;;  %v5840_v24 = vld [vmem:[%s7915_s1 + $0x5cc] ss:$16 sps:$4 sm:$0xff]  }
  0x87   :  { %1823 = vmatpush1.bf16.msra.mxu0 %v5736_v25  ;;  %2275 = vmatpush1.bf16.msra.mxu1 %v5739_v26  ;;  %v5834_v25 = vld [vmem:[%s7916_s0 + $0x190] ss:$28 sps:$4 sm:$0xff]  }
  0x88   :  { %1824 = vmatprep.subr.bf16.mxu0 %v5747_v27  ;;  %2276 = vmatprep.subr.bf16.mxu1 %v5750_v28  ;;  %v5835_v26 = vld [vmem:[%s7915_s1 + $0x5c0] ss:$16 sps:$4 sm:$0xff]   ;;  %v5838_v27 = vld [vmem:[%s7915_s1 + $0x5c8] ss:$16 sps:$4 sm:$0xff]   ;;  %v5843_v28 = vld [vmem:[%s7915_s1 + $0x5e4] ss:$16 sps:$4 sm:$0xff]  }
  0x8a   :  { %1750 = vmatmul.mubr.bf16.gmra.mrb[4].mxu0 %v5744_v29  ;;  %2202 = vmatmul.mubr.bf16.gmra.mrb[4].mxu1 %v5744_v29  ;;  %v5846_v29 = vld [vmem:[%s7915_s1 + $0x5ec] ss:$16 sps:$4 sm:$0xff]  }
  0x8b   :  { %1825 = vmatpush1.bf16.msra.mxu0 %v5745_v30  ;;  %2277 = vmatpush1.bf16.msra.mxu1 %v5748_v31  ;;  %v5849_v30 = vld [vmem:[%s7916_s0 + $0x14] ss:$28 sps:$4 sm:$0xff]  }
  0x8c   :  { %1826 = vmatprep.subr.bf16.mxu0 %v5753_v32  ;;  %2278 = vmatprep.subr.bf16.mxu1 %v5756_v33  ;;  %v5841_v31 = vld [vmem:[%s7915_s1 + $0x5e0] ss:$16 sps:$4 sm:$0xff]   ;;  %v5844_v32 = vld [vmem:[%s7915_s1 + $0x5e8] ss:$16 sps:$4 sm:$0xff]   ;;  %v5852_v33 = vld [vmem:[%s7915_s1 + $0x604] ss:$16 sps:$4 sm:$0xff]  }
  0x8d   :  { %1759 = vmatprep.mubr.bf16.mxu0 %v5757_v34  ;;  %2211 = vmatprep.mubr.bf16.mxu1 %v5757_v34  ;;  %v5876_v34 = vld [vmem:[%s7915_s1 + $0x60c] ss:$16 sps:$4 sm:$0xff]  }
  0x8f   :  { %1827 = vmatpush1.bf16.msra.mxu0 %v5751_v35  ;;  %2279 = vmatpush1.bf16.msra.mxu1 %v5754_v36  ;;  %v5847_v35 = vld [vmem:[%s7916_s0 + $0x10] ss:$28 sps:$4 sm:$0xff]  }
  0x90   :  { %1828 = vmatprep.subr.bf16.mxu0 %v5762_v37  ;;  %2280 = vmatprep.subr.bf16.mxu1 %v5765_v38  ;;  %v5850_v36 = vld [vmem:[%s7915_s1 + $0x600] ss:$16 sps:$4 sm:$0xff]   ;;  %v5853_v37 = vld [vmem:[%s7916_s0 + $0x4c] ss:$28 sps:$4 sm:$0xff]  }
  0x91   :  { %v5874_v38 = vld [vmem:[%s7915_s1 + $0x608] ss:$16 sps:$4 sm:$0xff]  }
  0x92   :  { %1760 = vmatmul.mubr.bf16.gmra.mrb[8].mxu0 %v5759_v39  ;;  %2212 = vmatmul.mubr.bf16.gmra.mrb[8].mxu1 %v5759_v39  ;;  %v5887_v39 = vld [vmem:[%s7917_s3 + $0x4] ss:$16 sps:$4 sm:$0xff]  }
  0x93   :  { %1829 = vmatpush1.bf16.msra.mxu0 %v5760_v40  ;;  %2281 = vmatpush1.bf16.msra.mxu1 %v5763_v41  ;;  %v5890_v40 = vld [vmem:[%s7917_s3 + $0xc] ss:$16 sps:$4 sm:$0xff]   ;;  %v5855_v41 = vld [vmem:[%s7916_s0 + $0x48] ss:$28 sps:$4 sm:$0xff]  }
  0x94   :  { %1830 = vmatprep.subr.bf16.mxu0 %v5768_v42  ;;  %2282 = vmatprep.subr.bf16.mxu1 %v5771_v43  ;;  %v5856_v42 = vld [vmem:[%s7916_s0 + $0x84] ss:$28 sps:$4 sm:$0xff]  }
  0x95   :  { %1769 = vmatprep.mubr.bf16.mxu0 %v5772_v44  ;;  %2221 = vmatprep.mubr.bf16.mxu1 %v5772_v44  ;;  %v5858_v43 = vld [vmem:[%s7916_s0 + $0x80] ss:$28 sps:$4 sm:$0xff]  }
  0x96   :  { %v5859_v44 = vld [vmem:[%s7916_s0 + $0xbc] ss:$28 sps:$4 sm:$0xff]  }
  0x97   :  { %1831 = vmatpush1.bf16.msra.mxu0 %v5766_v45  ;;  %2283 = vmatpush1.bf16.msra.mxu1 %v5769_v46  ;;  %v5861_v45 = vld [vmem:[%s7916_s0 + $0xb8] ss:$28 sps:$4 sm:$0xff]  }
  0x98   :  { %1832 = vmatprep.subr.bf16.mxu0 %v5777_v47  ;;  %2284 = vmatprep.subr.bf16.mxu1 %v5780_v48  ;;  %v5862_v46 = vld [vmem:[%s7916_s0 + $0xf4] ss:$28 sps:$4 sm:$0xff]   ;;  %v5865_v48 = vld [vmem:[%s7916_s0 + $0x12c] ss:$28 sps:$4 sm:$0xff]  }
  0x99   :  { %v5864_v47 = vld [vmem:[%s7916_s0 + $0xf0] ss:$28 sps:$4 sm:$0xff]  }
  0x9a   :  { %1770 = vmatmul.mubr.bf16.gmra.mrb[12].mxu0 %v5774_v49  ;;  %2222 = vmatmul.mubr.bf16.gmra.mrb[12].mxu1 %v5774_v49  ;;  %v5867_v49 = vld [vmem:[%s7916_s0 + $0x128] ss:$28 sps:$4 sm:$0xff]  }
  0x9b   :  { %1833 = vmatpush1.bf16.msra.mxu0 %v5775_v50  ;;  %2285 = vmatpush1.bf16.msra.mxu1 %v5778_v51  ;;  %v5868_v50 = vld [vmem:[%s7916_s0 + $0x164] ss:$28 sps:$4 sm:$0xff]  }
  0x9c   :  { %1834 = vmatprep.subr.bf16.mxu0 %v5783_v52  ;;  %2286 = vmatprep.subr.bf16.mxu1 %v5786_v53  ;;  %v5870_v51 = vld [vmem:[%s7916_s0 + $0x160] ss:$28 sps:$4 sm:$0xff]   ;;  %v5873_v53 = vld [vmem:[%s7916_s0 + $0x198] ss:$28 sps:$4 sm:$0xff]  }
  0x9d   :  { %1779 = vmatprep.mubr.bf16.mxu0 %v5787_v54  ;;  %2231 = vmatprep.mubr.bf16.mxu1 %v5787_v54  ;;  %v5871_v52 = vld [vmem:[%s7916_s0 + $0x19c] ss:$28 sps:$4 sm:$0xff]   ;;  %v6173_v54 = vmov 0  }
  0x9f   :  { %1835 = vmatpush1.bf16.msra.mxu0 %v5781_v55  ;;  %2287 = vmatpush1.bf16.msra.mxu1 %v5784_v56  ;;  %v5877_v55 = vld [vmem:[%s7916_s0 + $0x18] ss:$28 sps:$4 sm:$0xff]   ;;  %v5885_v56 = vld [vmem:[%s7917_s3] ss:$16 sps:$4 sm:$0xff]  }
  0xa0   :  { %1836 = vmatprep.subr.bf16.mxu0 %v5792_v57  ;;  %2288 = vmatprep.subr.bf16.mxu1 %v5795_v58  ;;  %v5888_v57 = vld [vmem:[%s7917_s3 + $0x8] ss:$16 sps:$4 sm:$0xff]   ;;  %v5893_v58 = vld [vmem:[%s7917_s3 + $0x24] ss:$16 sps:$4 sm:$0xff]  }
  0xa2   :  { %1780 = vmatmul.mubr.bf16.gmra.mrb[16].mxu0 %v5789_v59  ;;  %2232 = vmatmul.mubr.bf16.gmra.mrb[16].mxu1 %v5789_v59  ;;  %v5896_v59 = vld [vmem:[%s7917_s3 + $0x2c] ss:$16 sps:$4 sm:$0xff]  }
  0xa3   :  { %1837 = vmatpush1.bf16.msra.mxu0 %v5790_v60  ;;  %2289 = vmatpush1.bf16.msra.mxu1 %v5793_v61  ;;  %v5891_v60 = vld [vmem:[%s7917_s3 + $0x20] ss:$16 sps:$4 sm:$0xff]   ;;  %v5894_v61 = vld [vmem:[%s7917_s3 + $0x28] ss:$16 sps:$4 sm:$0xff]  }
  0xa4   :  { %1838 = vmatprep.subr.bf16.mxu0 %v5798_v62  ;;  %2290 = vmatprep.subr.bf16.mxu1 %v5801_v63  ;;  %v5899_v62 = vld [vmem:[%s7917_s3 + $0x44] ss:$16 sps:$4 sm:$0xff]   ;;  %v5902_v63 = vld [vmem:[%s7917_s3 + $0x4c] ss:$16 sps:$4 sm:$0xff]  }
  0xa5   :  { %1789 = vmatprep.mubr.bf16.mxu0 %v5802_v1  ;;  %2241 = vmatprep.mubr.bf16.mxu1 %v5802_v1  ;;  %v5897_v1 = vld [vmem:[%s7917_s3 + $0x40] ss:$16 sps:$4 sm:$0xff]  }
  0xa7   :  { %1839 = vmatpush1.bf16.msra.mxu0 %v5796_v0  ;;  %2291 = vmatpush1.bf16.msra.mxu1 %v5799_v2  ;;  %v5878_v0 = vld [vmem:[%s7916_s0 + $0x50] ss:$28 sps:$4 sm:$0xff]   ;;  %v5900_v2 = vld [vmem:[%s7917_s3 + $0x48] ss:$16 sps:$4 sm:$0xff]  }
  0xa8   :  { %1840 = vmatprep.subr.bf16.mxu0 %v5807_v3  ;;  %2292 = vmatprep.subr.bf16.mxu1 %v5810_v5  ;;  %v5905_v3 = vld [vmem:[%s7917_s3 + $0x64] ss:$16 sps:$4 sm:$0xff]   ;;  %v5903_v5 = vld [vmem:[%s7917_s3 + $0x60] ss:$16 sps:$4 sm:$0xff]  }
  0xaa   :  { %1790 = vmatmul.mubr.bf16.gmra.mrb[20].mxu0 %v5804_v4  ;;  %2242 = vmatmul.mubr.bf16.gmra.mrb[20].mxu1 %v5804_v4  ;;  %v5908_v4 = vld [vmem:[%s7917_s3 + $0x6c] ss:$16 sps:$4 sm:$0xff]  }
  0xab   :  { %1841 = vmatpush1.bf16.msra.mxu0 %v5805_v6  ;;  %2293 = vmatpush1.bf16.msra.mxu1 %v5808_v7  ;;  %v5906_v6 = vld [vmem:[%s7917_s3 + $0x68] ss:$16 sps:$4 sm:$0xff]   ;;  %v5911_v7 = vld [vmem:[%s7917_s3 + $0x84] ss:$16 sps:$4 sm:$0xff]  }
  0xac   :  { %1842 = vmatprep.subr.bf16.mxu0 %v5813_v8  ;;  %2294 = vmatprep.subr.bf16.mxu1 %v5816_v9  ;;  %v5914_v8 = vld [vmem:[%s7917_s3 + $0x8c] ss:$16 sps:$4 sm:$0xff]   ;;  %v5879_v9 = vld [vmem:[%s7916_s0 + $0x88] ss:$28 sps:$4 sm:$0xff]  }
  0xad   :  { %1799 = vmatprep.mubr.bf16.mxu0 %v5817_v10  ;;  %2251 = vmatprep.mubr.bf16.mxu1 %v5817_v10  ;;  %v5909_v10 = vld [vmem:[%s7917_s3 + $0x80] ss:$16 sps:$4 sm:$0xff]  }
  0xaf   :  { %1843 = vmatpush1.bf16.msra.mxu0 %v5811_v11  ;;  %2295 = vmatpush1.bf16.msra.mxu1 %v5814_v12  ;;  %v5912_v11 = vld [vmem:[%s7917_s3 + $0x88] ss:$16 sps:$4 sm:$0xff]   ;;  %v5917_v12 = vld [vmem:[%s7917_s3 + $0xa4] ss:$16 sps:$4 sm:$0xff]  }
  0xb0   :  { %1844 = vmatprep.subr.bf16.mxu0 %v5822_v13  ;;  %2296 = vmatprep.subr.bf16.mxu1 %v5825_v14  ;;  %v5920_v13 = vld [vmem:[%s7917_s3 + $0xac] ss:$16 sps:$4 sm:$0xff]   ;;  %v5915_v14 = vld [vmem:[%s7917_s3 + $0xa0] ss:$16 sps:$4 sm:$0xff]  }
  0xb2   :  { %1800 = vmatmul.mubr.bf16.gmra.mrb[24].mxu0 %v5819_v15  ;;  %2252 = vmatmul.mubr.bf16.gmra.mrb[24].mxu1 %v5819_v15  ;;  %v5918_v15 = vld [vmem:[%s7917_s3 + $0xa8] ss:$16 sps:$4 sm:$0xff]  }
  0xb3   :  { %1845 = vmatpush1.bf16.msra.mxu0 %v5820_v16  ;;  %2297 = vmatpush1.bf16.msra.mxu1 %v5823_v17  ;;  %v5923_v16 = vld [vmem:[%s7917_s3 + $0xc4] ss:$16 sps:$4 sm:$0xff]   ;;  %v5926_v17 = vld [vmem:[%s7917_s3 + $0xcc] ss:$16 sps:$4 sm:$0xff]  }
  0xb4   :  { %1846 = vmatprep.subr.bf16.mxu0 %v5828_v18  ;;  %2298 = vmatprep.subr.bf16.mxu1 %v5831_v19  ;;  %v5880_v18 = vld [vmem:[%s7916_s0 + $0xc0] ss:$28 sps:$4 sm:$0xff]  }
  0xb5   :  { %1809 = vmatprep.mubr.bf16.mxu0 %v5832_v20  ;;  %2261 = vmatprep.mubr.bf16.mxu1 %v5832_v20  ;;  %v5921_v19 = vld [vmem:[%s7917_s3 + $0xc0] ss:$16 sps:$4 sm:$0xff]   ;;  %v5924_v20 = vld [vmem:[%s7917_s3 + $0xc8] ss:$16 sps:$4 sm:$0xff]  }
  0xb7   :  { %1847 = vmatpush1.bf16.msra.mxu0 %v5826_v21  ;;  %2299 = vmatpush1.bf16.msra.mxu1 %v5829_v22  ;;  %v5929_v21 = vld [vmem:[%s7917_s3 + $0xe4] ss:$16 sps:$4 sm:$0xff]   ;;  %v5932_v22 = vld [vmem:[%s7917_s3 + $0xec] ss:$16 sps:$4 sm:$0xff]  }
  0xb8   :  { %1848 = vmatprep.subr.bf16.mxu0 %v5837_v23  ;;  %2300 = vmatprep.subr.bf16.mxu1 %v5840_v24  ;;  %v5927_v23 = vld [vmem:[%s7917_s3 + $0xe0] ss:$16 sps:$4 sm:$0xff]   ;;  %v5930_v24 = vld [vmem:[%s7917_s3 + $0xe8] ss:$16 sps:$4 sm:$0xff]  }
  0xba   :  { %1810 = vmatmul.mubr.bf16.gmra.mrb[28].mxu0 %v5834_v25  ;;  %2262 = vmatmul.mubr.bf16.gmra.mrb[28].mxu1 %v5834_v25  ;;  %v5935_v25 = vld [vmem:[%s7917_s3 + $0x104] ss:$16 sps:$4 sm:$0xff]  }
  0xbb   :  { %1849 = vmatpush1.bf16.msra.mxu0 %v5835_v26  ;;  %2301 = vmatpush1.bf16.msra.mxu1 %v5838_v27  ;;  %v5938_v26 = vld [vmem:[%s7917_s3 + $0x10c] ss:$16 sps:$4 sm:$0xff]   ;;  %v5881_v27 = vld [vmem:[%s7916_s0 + $0xf8] ss:$28 sps:$4 sm:$0xff]  }
  0xbc   :  { %1850 = vmatprep.subr.bf16.mxu0 %v5843_v28  ;;  %2302 = vmatprep.subr.bf16.mxu1 %v5846_v29  ;;  %v5933_v28 = vld [vmem:[%s7917_s3 + $0x100] ss:$16 sps:$4 sm:$0xff]   ;;  %v5936_v29 = vld [vmem:[%s7917_s3 + $0x108] ss:$16 sps:$4 sm:$0xff]  }
  0xbd   :  { %1852 = vmatprep.mubr.bf16.mxu0 %v5849_v30  ;;  %2304 = vmatprep.mubr.bf16.mxu1 %v5849_v30  ;;  %v5941_v30 = vld [vmem:[%s7917_s3 + $0x124] ss:$16 sps:$4 sm:$0xff]  }
  0xbf   :  { %1851 = vmatpush1.bf16.msra.mxu0 %v5841_v31  ;;  %2303 = vmatpush1.bf16.msra.mxu1 %v5844_v32  ;;  %v5944_v31 = vld [vmem:[%s7917_s3 + $0x12c] ss:$16 sps:$4 sm:$0xff]   ;;  %v5939_v32 = vld [vmem:[%s7917_s3 + $0x120] ss:$16 sps:$4 sm:$0xff]  }
  0xc0   :  { %1933 = vmatprep.subr.bf16.mxu0 %v5852_v33  ;;  %2385 = vmatprep.subr.bf16.mxu1 %v5876_v34  ;;  %v5942_v33 = vld [vmem:[%s7917_s3 + $0x128] ss:$16 sps:$4 sm:$0xff]   ;;  %v5947_v34 = vld [vmem:[%s7917_s3 + $0x144] ss:$16 sps:$4 sm:$0xff]  }
  0xc2   :  { %1853 = vmatmul.mubr.bf16.vlgmr.msra.gmra.mrb[0].mxu0 %v5847_v35  ;;  %2305 = vmatmul.mubr.bf16.vlgmr.msra.gmra.mrb[0].mxu1 %v5847_v35  ;;  %v5950_v35 = vld [vmem:[%s7917_s3 + $0x14c] ss:$16 sps:$4 sm:$0xff]  }
  0xc3   :  { %1934 = vmatpush1.bf16.msra.mxu0 %v5850_v36  ;;  %1862 = vmatprep.mubr.bf16.mxu0 %v5853_v37  ;;  %v5882_v36 = vld [vmem:[%s7916_s0 + $0x130] ss:$28 sps:$4 sm:$0xff]  }
  0xc4   :  { %2314 = vmatprep.mubr.bf16.mxu1 %v5853_v37  ;;  %2386 = vmatpush1.bf16.msra.mxu1 %v5874_v38  ;;  %v5945_v37 = vld [vmem:[%s7917_s3 + $0x140] ss:$16 sps:$4 sm:$0xff]   ;;  %v5948_v38 = vld [vmem:[%s7917_s3 + $0x148] ss:$16 sps:$4 sm:$0xff]  }
  0xc5   :  { %3384 = vmatprep.subr.bf16.mxu0 %v5887_v39  ;;  %3610 = vmatprep.subr.bf16.mxu1 %v5890_v40  ;;  %v5953_v39 = vld [vmem:[%s7917_s3 + $0x164] ss:$16 sps:$4 sm:$0xff]   ;;  %v5956_v40 = vld [vmem:[%s7917_s3 + $0x16c] ss:$16 sps:$4 sm:$0xff]  }
  0xca   :  { %1863 = vmatmul.mubr.bf16.gmra.mrb[4].mxu0 %v5855_v41  ;;  %2315 = vmatmul.mubr.bf16.gmra.mrb[4].mxu1 %v5855_v41  ;;  %v5951_v41 = vld [vmem:[%s7917_s3 + $0x160] ss:$16 sps:$4 sm:$0xff]  }
  0xcb   :  { %1872 = vmatprep.mubr.bf16.mxu0 %v5856_v42  ;;  %2324 = vmatprep.mubr.bf16.mxu1 %v5856_v42  ;;  %v5954_v42 = vld [vmem:[%s7917_s3 + $0x168] ss:$16 sps:$4 sm:$0xff]  }
  0xd2   :  { %1873 = vmatmul.mubr.bf16.gmra.mrb[8].mxu0 %v5858_v43  ;;  %2325 = vmatmul.mubr.bf16.gmra.mrb[8].mxu1 %v5858_v43  ;;  %v5959_v43 = vld [vmem:[%s7917_s3 + $0x184] ss:$16 sps:$4 sm:$0xff]  }
  0xd3   :  { %1882 = vmatprep.mubr.bf16.mxu0 %v5859_v44  ;;  %2334 = vmatprep.mubr.bf16.mxu1 %v5859_v44  ;;  %v5962_v44 = vld [vmem:[%s7917_s3 + $0x18c] ss:$16 sps:$4 sm:$0xff]  }
  0xda   :  { %1883 = vmatmul.mubr.bf16.gmra.mrb[12].mxu0 %v5861_v45  ;;  %2335 = vmatmul.mubr.bf16.gmra.mrb[12].mxu1 %v5861_v45  ;;  %v5883_v45 = vld [vmem:[%s7916_s0 + $0x168] ss:$28 sps:$4 sm:$0xff]  }
  0xdb   :  { %1892 = vmatprep.mubr.bf16.mxu0 %v5862_v46  ;;  %2344 = vmatprep.mubr.bf16.mxu1 %v5862_v46  ;;  %v5957_v46 = vld [vmem:[%s7917_s3 + $0x180] ss:$16 sps:$4 sm:$0xff]  }
  0xe2   :  { %1893 = vmatmul.mubr.bf16.gmra.mrb[16].mxu0 %v5864_v47  ;;  %2345 = vmatmul.mubr.bf16.gmra.mrb[16].mxu1 %v5864_v47  ;;  %v5960_v47 = vld [vmem:[%s7917_s3 + $0x188] ss:$16 sps:$4 sm:$0xff]  }
  0xe3   :  { %1902 = vmatprep.mubr.bf16.mxu0 %v5865_v48  ;;  %2354 = vmatprep.mubr.bf16.mxu1 %v5865_v48  ;;  %v5965_v48 = vld [vmem:[%s7917_s3 + $0x1a4] ss:$16 sps:$4 sm:$0xff]  }
  0xea   :  { %1903 = vmatmul.mubr.bf16.gmra.mrb[20].mxu0 %v5867_v49  ;;  %2355 = vmatmul.mubr.bf16.gmra.mrb[20].mxu1 %v5867_v49  ;;  %v5968_v49 = vld [vmem:[%s7917_s3 + $0x1ac] ss:$16 sps:$4 sm:$0xff]  }
  0xeb   :  { %1912 = vmatprep.mubr.bf16.mxu0 %v5868_v50  ;;  %2364 = vmatprep.mubr.bf16.mxu1 %v5868_v50  ;;  %v5963_v50 = vld [vmem:[%s7917_s3 + $0x1a0] ss:$16 sps:$4 sm:$0xff]  }
  0xf2   :  { %1913 = vmatmul.mubr.bf16.gmra.mrb[24].mxu0 %v5870_v51  ;;  %2365 = vmatmul.mubr.bf16.gmra.mrb[24].mxu1 %v5870_v51  ;;  %v5966_v51 = vld [vmem:[%s7917_s3 + $0x1a8] ss:$16 sps:$4 sm:$0xff]  }
  0xf3   :  { %1922 = vmatprep.mubr.bf16.mxu0 %v5871_v52  ;;  %2374 = vmatprep.mubr.bf16.mxu1 %v5871_v52  ;;  %v5884_v52 = vld [vmem:[%s7916_s0 + $0x1a0] ss:$28 sps:$4 sm:$0xff]  }
  0xfa   :  { %1923 = vmatmul.mubr.bf16.gmra.mrb[28].mxu0 %v5873_v53  ;;  %2375 = vmatmul.mubr.bf16.gmra.mrb[28].mxu1 %v5873_v53  ;;  %v5971_v53 = vld [vmem:[%s7917_s3 + $0x1c4] ss:$16 sps:$4 sm:$0xff]  }
  0xfb   :  { %1965 = vmatprep.mubr.bf16.mxu0 %v6173_v54  ;;  %2417 = vmatprep.mubr.bf16.mxu1 %v6173_v54 }
 0x102   :  { %4821 = vmatmul.mubr.msk.bf16.vlgmr.msra.gmra.mrb[0].mxu0 %vm1569_vm0, %v5877_v55  ;;  %4829 = vmatmul.mubr.msk.bf16.vlgmr.msra.gmra.mrb[0].mxu1 %vm1569_vm0, %v5877_v55  ;;  %v5969_v55 = vld [vmem:[%s7917_s3 + $0x1c0] ss:$16 sps:$4 sm:$0xff]  }
 0x103   :  { %1975 = vmatprep.mubr.bf16.mxu0 %v6173_v54  ;;  %2427 = vmatprep.mubr.bf16.mxu1 %v6173_v54 }
 0x104   :  { %3385 = vmatpush1.bf16.msra.mxu0 %v5885_v56  ;;  %3611 = vmatpush1.bf16.msra.mxu1 %v5888_v57  ;;  %v5972_v56 = vld [vmem:[%s7917_s3 + $0x1c8] ss:$16 sps:$4 sm:$0xff]   ;;  %v5977_v57 = vld [vmem:[%s7917_s3 + $0x1e4] ss:$16 sps:$4 sm:$0xff]  }
 0x105   :  { %3386 = vmatprep.subr.bf16.mxu0 %v5893_v58  ;;  %3612 = vmatprep.subr.bf16.mxu1 %v5896_v59  ;;  %v5980_v58 = vld [vmem:[%s7917_s3 + $0x1ec] ss:$16 sps:$4 sm:$0xff]   ;;  %v5975_v59 = vld [vmem:[%s7917_s3 + $0x1e0] ss:$16 sps:$4 sm:$0xff]  }
 0x108   :  { %3387 = vmatpush1.bf16.msra.mxu0 %v5891_v60  ;;  %3613 = vmatpush1.bf16.msra.mxu1 %v5894_v61  ;;  %v5978_v60 = vld [vmem:[%s7917_s3 + $0x1e8] ss:$16 sps:$4 sm:$0xff]   ;;  %v5983_v61 = vld [vmem:[%s7917_s3 + $0x204] ss:$16 sps:$4 sm:$0xff]  }
 0x109   :  { %3388 = vmatprep.subr.bf16.mxu0 %v5899_v62  ;;  %3614 = vmatprep.subr.bf16.mxu1 %v5902_v63  ;;  %v5986_v62 = vld [vmem:[%s7917_s3 + $0x20c] ss:$16 sps:$4 sm:$0xff]   ;;  %v289_v63 = vlaneseq }
 0x10a   :  { %4822 = vmatmul.mubr.msk.bf16.gmra.mrb[4].mxu0 %vm1569_vm0, %v5878_v0  ;;  %4830 = vmatmul.mubr.msk.bf16.gmra.mrb[4].mxu1 %vm1569_vm0, %v5878_v0 }
 0x10b   :  { %1985 = vmatprep.mubr.bf16.mxu0 %v6173_v54  ;;  %2437 = vmatprep.mubr.bf16.mxu1 %v6173_v54  ;;  %v7200_v0 = vshrl.u32 %v289_v63, 7 }
 0x10c   :  { %3389 = vmatpush1.bf16.msra.mxu0 %v5897_v1  ;;  %3615 = vmatpush1.bf16.msra.mxu1 %v5900_v2 }
 0x10d   :  { %3390 = vmatprep.subr.bf16.mxu0 %v5905_v3  ;;  %3616 = vmatprep.subr.bf16.mxu1 %v5908_v4  ;;  %v291_v1 = vsub.s32 0, %v7200_v0  ;;  %v299_v2 = vsub.s32 2, %v7200_v0  ;;  %v287_v3 = vld [vmem:[%s7918_s2] sm:$0xf]  ;;  %v295_v4 = vsub.s32 1, %v7200_v0 }
 0x110   :  { %3391 = vmatpush1.bf16.msra.mxu0 %v5903_v5  ;;  %3617 = vmatpush1.bf16.msra.mxu1 %v5906_v6  ;;  %v303_v5 = vsub.s32 3, %v7200_v0  ;;  %v7211_v6 = vrot.slane %v287_v3, %v291_v1 }
 0x111   :  { %3392 = vmatprep.subr.bf16.mxu0 %v5911_v7  ;;  %3618 = vmatprep.subr.bf16.mxu1 %v5914_v8  ;;  %v7215_v7 = vrot.slane %v287_v3, %v299_v2  ;;  %v7219_v8 = vrot.slane %v287_v3, %v295_v4 }
 0x112   :  { %4823 = vmatmul.mubr.msk.bf16.gmra.mrb[8].mxu0 %vm1569_vm0, %v5879_v9  ;;  %4831 = vmatmul.mubr.msk.bf16.gmra.mrb[8].mxu1 %vm1569_vm0, %v5879_v9  ;;  %v7223_v9 = vrot.slane %v287_v3, %v303_v5 }
 0x113   :  { %1995 = vmatprep.mubr.bf16.mxu0 %v6173_v54  ;;  %2447 = vmatprep.mubr.bf16.mxu1 %v6173_v54 }
 0x114   :  { %3393 = vmatpush1.bf16.msra.mxu0 %v5909_v10  ;;  %3619 = vmatpush1.bf16.msra.mxu1 %v5912_v11 }
 0x115   :  { %3394 = vmatprep.subr.bf16.mxu0 %v5917_v12  ;;  %3620 = vmatprep.subr.bf16.mxu1 %v5920_v13 }
 0x118   :  { %3395 = vmatpush1.bf16.msra.mxu0 %v5915_v14  ;;  %3621 = vmatpush1.bf16.msra.mxu1 %v5918_v15 }
 0x119   :  { %3396 = vmatprep.subr.bf16.mxu0 %v5923_v16  ;;  %3622 = vmatprep.subr.bf16.mxu1 %v5926_v17 }
 0x11a   :  { %4824 = vmatmul.mubr.msk.bf16.gmra.mrb[12].mxu0 %vm1569_vm0, %v5880_v18  ;;  %4832 = vmatmul.mubr.msk.bf16.gmra.mrb[12].mxu1 %vm1569_vm0, %v5880_v18 }
 0x11b   :  { %2005 = vmatprep.mubr.bf16.mxu0 %v6173_v54  ;;  %2457 = vmatprep.mubr.bf16.mxu1 %v6173_v54 }
 0x11c   :  { %3397 = vmatpush1.bf16.msra.mxu0 %v5921_v19  ;;  %3623 = vmatpush1.bf16.msra.mxu1 %v5924_v20 }
 0x11d   :  { %3398 = vmatprep.subr.bf16.mxu0 %v5929_v21  ;;  %3624 = vmatprep.subr.bf16.mxu1 %v5932_v22 }
 0x120   :  { %3399 = vmatpush1.bf16.msra.mxu0 %v5927_v23  ;;  %3625 = vmatpush1.bf16.msra.mxu1 %v5930_v24 }
 0x121   :  { %3400 = vmatprep.subr.bf16.mxu0 %v5935_v25  ;;  %3626 = vmatprep.subr.bf16.mxu1 %v5938_v26 }
 0x122   :  { %4825 = vmatmul.mubr.msk.bf16.gmra.mrb[16].mxu0 %vm1569_vm0, %v5881_v27  ;;  %4833 = vmatmul.mubr.msk.bf16.gmra.mrb[16].mxu1 %vm1569_vm0, %v5881_v27 }
 0x123   :  { %2015 = vmatprep.mubr.bf16.mxu0 %v6173_v54  ;;  %2467 = vmatprep.mubr.bf16.mxu1 %v6173_v54 }
 0x124   :  { %3401 = vmatpush1.bf16.msra.mxu0 %v5933_v28  ;;  %3627 = vmatpush1.bf16.msra.mxu1 %v5936_v29 }
 0x125   :  { %3402 = vmatprep.subr.bf16.mxu0 %v5941_v30  ;;  %3628 = vmatprep.subr.bf16.mxu1 %v5944_v31 }
 0x128   :  { %3403 = vmatpush1.bf16.msra.mxu0 %v5939_v32  ;;  %3629 = vmatpush1.bf16.msra.mxu1 %v5942_v33 }
 0x129   :  { %3404 = vmatprep.subr.bf16.mxu0 %v5947_v34  ;;  %3630 = vmatprep.subr.bf16.mxu1 %v5950_v35  ;;  %v5981_v34 = vld [vmem:[%s7917_s3 + $0x200] ss:$16 sps:$4 sm:$0xff]   ;;  %v5984_v35 = vld [vmem:[%s7917_s3 + $0x208] ss:$16 sps:$4 sm:$0xff]  }
 0x12a   :  { %4826 = vmatmul.mubr.msk.bf16.gmra.mrb[20].mxu0 %vm1569_vm0, %v5882_v36  ;;  %4834 = vmatmul.mubr.msk.bf16.gmra.mrb[20].mxu1 %vm1569_vm0, %v5882_v36 }
 0x12b   :  { %2025 = vmatprep.mubr.bf16.mxu0 %v6173_v54  ;;  %2477 = vmatprep.mubr.bf16.mxu1 %v6173_v54 }
 0x12c   :  { %3405 = vmatpush1.bf16.msra.mxu0 %v5945_v37  ;;  %3631 = vmatpush1.bf16.msra.mxu1 %v5948_v38  ;;  %v5989_v38 = vld [vmem:[%s7917_s3 + $0x224] ss:$16 sps:$4 sm:$0xff]  }
 0x12d   :  { %3406 = vmatprep.subr.bf16.mxu0 %v5953_v39  ;;  %3632 = vmatprep.subr.bf16.mxu1 %v5956_v40 }
 0x130   :  { %3407 = vmatpush1.bf16.msra.mxu0 %v5951_v41  ;;  %3633 = vmatpush1.bf16.msra.mxu1 %v5954_v42 }
 0x131   :  { %3408 = vmatprep.subr.bf16.mxu0 %v5959_v43  ;;  %3634 = vmatprep.subr.bf16.mxu1 %v5962_v44  ;;  %v5992_v43 = vld [vmem:[%s7917_s3 + $0x22c] ss:$16 sps:$4 sm:$0xff]  }
 0x132   :  { %4827 = vmatmul.mubr.msk.bf16.gmra.mrb[24].mxu0 %vm1569_vm0, %v5883_v45  ;;  %4835 = vmatmul.mubr.msk.bf16.gmra.mrb[24].mxu1 %vm1569_vm0, %v5883_v45 }
 0x133   :  { %2035 = vmatprep.mubr.bf16.mxu0 %v6173_v54  ;;  %2487 = vmatprep.mubr.bf16.mxu1 %v6173_v54  ;;  %v5974_v54 = vld [vmem:[%s7917_s3 + $0x1cc] ss:$16 sps:$4 sm:$0xff]  }
 0x134   :  { %3409 = vmatpush1.bf16.msra.mxu0 %v5957_v46  ;;  %3635 = vmatpush1.bf16.msra.mxu1 %v5960_v47 }
 0x135   :  { %3410 = vmatprep.subr.bf16.mxu0 %v5965_v48  ;;  %3636 = vmatprep.subr.bf16.mxu1 %v5968_v49 }
 0x138   :  { %3411 = vmatpush1.bf16.msra.mxu0 %v5963_v50  ;;  %3637 = vmatpush1.bf16.msra.mxu1 %v5966_v51 }
 0x139   :  { %3412 = vmatprep.subr.bf16.mxu0 %v5971_v53  ;;  %3638 = vmatprep.subr.bf16.mxu1 %v5974_v54  ;;  %v5990_v53 = vld [vmem:[%s7917_s3 + $0x228] ss:$16 sps:$4 sm:$0xff]  }
 0x13a   :  { %4828 = vmatmul.mubr.msk.bf16.gmra.mrb[28].mxu0 %vm1569_vm0, %v5884_v52  ;;  %4836 = vmatmul.mubr.msk.bf16.gmra.mrb[28].mxu1 %vm1569_vm0, %v5884_v52  ;;  %v5987_v52 = vld [vmem:[%s7917_s3 + $0x220] ss:$16 sps:$4 sm:$0xff]  }
 0x13c   :  { %3413 = vmatpush1.bf16.msra.mxu0 %v5969_v55  ;;  %3639 = vmatpush1.bf16.msra.mxu1 %v5972_v56 }
 0x13d   :  { %3414 = vmatprep.subr.bf16.mxu0 %v5977_v57  ;;  %3640 = vmatprep.subr.bf16.mxu1 %v5980_v58  ;;  %v5995_v58 = vld [vmem:[%s7917_s3 + $0x244] ss:$16 sps:$4 sm:$0xff]  }
 0x140   :  { %3415 = vmatpush1.bf16.msra.mxu0 %v5975_v59  ;;  %3641 = vmatpush1.bf16.msra.mxu1 %v5978_v60  ;;  %v5998_v59 = vld [vmem:[%s7917_s3 + $0x24c] ss:$16 sps:$4 sm:$0xff]  }
 0x141   :  { %3497 = vmatprep.subr.bf16.mxu0 %v5983_v61  ;;  %3723 = vmatprep.subr.bf16.mxu1 %v5986_v62 }
 0x1d5   :  { %v1967_v10 = vpop.f32.mrb[0].mxu0  ;;  %v2419_v11 = vpop.f32.mrb[0].mxu1 }
 0x1d6   :  { %v5126_v12 = vadd.f32 %v1967_v10, %v7211_v6  ;;  %v5158_v13 = vadd.f32 %v2419_v11, %v7215_v7  ;;  %v1969_v14 = vpop.f32.mrb[1].mxu0  ;;  %v2421_v15 = vpop.f32.mrb[1].mxu1 }
 0x1d7   :  { %v5127_v16 = vadd.f32 %v1969_v14, %v7219_v8  ;;  %v5159_v17 = vadd.f32 %v2421_v15, %v7223_v9  ;;  %v1971_v18 = vpop.f32.mrb[2].mxu0  ;;  %v2423_v19 = vpop.f32.mrb[2].mxu1  ;;  %v5993_v15 = vld [vmem:[%s7917_s3 + $0x240] ss:$16 sps:$4 sm:$0xff]  }
 0x1d8   :  { %v5128_v20 = vadd.f32 %v1971_v18, %v7211_v6  ;;  %v5160_v21 = vadd.f32 %v2423_v19, %v7215_v7  ;;  %v1973_v22 = vpop.f32.mrb[3].mxu0  ;;  %v2425_v23 = vpop.f32.mrb[3].mxu1  ;;  %v2498_v24 = vmax.f32 %v5126_v12, 0.0  ;;  %v2500_v25 = vmax.f32 %v5158_v13, 0.0  ;;  %v6001_v19 = vld [vmem:[%s7917_s3 + $0x264] ss:$16 sps:$4 sm:$0xff]  }
 0x1d9   :  { %v5129_v26 = vadd.f32 %v1973_v22, %v7219_v8  ;;  %v5161_v27 = vadd.f32 %v2425_v23, %v7223_v9  ;;  %v2499_v30 = vmax.f32 %v5127_v16, 0.0  ;;  %v2501_v31 = vmax.f32 %v5159_v17, 0.0  ;;  %v5996_v16 = vld [vmem:[%s7917_s3 + $0x248] ss:$16 sps:$4 sm:$0xff]  }
 0x1da   :  { %v2502_v28 = vmax.f32 %v5128_v20, 0.0  ;;  %v2504_v29 = vmax.f32 %v5160_v21, 0.0 }
 0x1db   :  { %v2503_v32 = vmax.f32 %v5129_v26, 0.0  ;;  %v2505_v33 = vmax.f32 %v5161_v27, 0.0 }
 0x1dc   :  { %v2562_v36 = vpack.c.bf16 %v2502_v28, %v2498_v24  ;;  %v7239_v37 = vpack.c.bf16 %v2504_v29, %v2500_v25  ;;  %v6004_v28 = vld [vmem:[%s7917_s3 + $0x26c] ss:$16 sps:$4 sm:$0xff]  }
 0x1dd   :  { %v2563_v39 = vpack.c.bf16 %v2503_v32, %v2499_v30  ;;  %v7244_v40 = vpack.c.bf16 %v2505_v33, %v2501_v31  ;;  %v1977_v41 = vpop.f32.mrb[4].mxu0  ;;  %v2429_v42 = vpop.f32.mrb[4].mxu1  ;;  %v5999_v33 = vld [vmem:[%s7917_s3 + $0x260] ss:$16 sps:$4 sm:$0xff]  }
 0x1de   :  { %v5130_v44 = vadd.f32 %v1977_v41, %v7211_v6  ;;  %v5162_v45 = vadd.f32 %v2429_v42, %v7215_v7  ;;  %v1979_v46 = vpop.f32.mrb[5].mxu0  ;;  %v2431_v47 = vpop.f32.mrb[5].mxu1  ;;  %v6007_v41 = vld [vmem:[%s7917_s3 + $0x284] ss:$16 sps:$4 sm:$0xff]  }
 0x1df   :  { %v5131_v48 = vadd.f32 %v1979_v46, %v7219_v8  ;;  %v5163_v49 = vadd.f32 %v2431_v47, %v7223_v9  ;;  %v1981_v50 = vpop.f32.mrb[6].mxu0  ;;  %v2433_v51 = vpop.f32.mrb[6].mxu1  ;;  %3416 = vmatprep.mubr.bf16.mxu0 %v2563_v39  ;;  %3642 = vmatprep.mubr.bf16.mxu1 %v2563_v39  ;;  %v6010_v46 = vld [vmem:[%s7917_s3 + $0x28c] ss:$16 sps:$4 sm:$0xff]  }
 0x1e0   :  { %v5132_v54 = vadd.f32 %v1981_v50, %v7211_v6  ;;  %v5164_v55 = vadd.f32 %v2433_v51, %v7215_v7  ;;  %v1983_v56 = vpop.f32.mrb[7].mxu0  ;;  %v2435_v57 = vpop.f32.mrb[7].mxu1  ;;  %3417 = vmatmul.mubr.bf16.vlgmr.msra.gmra.mrb[32].mxu0 %v2562_v36  ;;  %3643 = vmatmul.mubr.bf16.vlgmr.msra.gmra.mrb[32].mxu1 %v2562_v36  ;;  %v2506_v60 = vmax.f32 %v5130_v44, 0.0  ;;  %v2508_v61 = vmax.f32 %v5162_v45, 0.0 }
 0x1e1   :  { %v5133_v62 = vadd.f32 %v1983_v56, %v7219_v8  ;;  %v5165_v63 = vadd.f32 %v2435_v57, %v7223_v9  ;;  %3498 = vmatpush1.bf16.msra.mxu0 %v5981_v34  ;;  %3724 = vmatpush1.bf16.msra.mxu1 %v5984_v35  ;;  %v2507_v3 = vmax.f32 %v5131_v48, 0.0  ;;  %v2509_v10 = vmax.f32 %v5163_v49, 0.0  ;;  %v6002_v34 = vld [vmem:[%s7917_s3 + $0x268] ss:$16 sps:$4 sm:$0xff]   ;;  %v6013_v57 = vld [vmem:[%s7917_s3 + $0x2a4] ss:$16 sps:$4 sm:$0xff]  }
 0x1e2   :  { %v2510_v11 = vmax.f32 %v5132_v54, 0.0  ;;  %v2512_v12 = vmax.f32 %v5164_v55, 0.0  ;;  %3499 = vmatprep.subr.bf16.mxu0 %v5989_v38  ;;  %3725 = vmatprep.subr.bf16.mxu1 %v5992_v43  ;;  %v6008_v54 = vld [vmem:[%s7917_s3 + $0x288] ss:$16 sps:$4 sm:$0xff]  }
 0x1e3   :  { %v2511_v13 = vmax.f32 %v5133_v62, 0.0  ;;  %v2513_v14 = vmax.f32 %v5165_v63, 0.0  ;;  %v6016_v62 = vld [vmem:[%s7917_s3 + $0x2ac] ss:$16 sps:$4 sm:$0xff]  }
 0x1e4   :  { %v2566_v17 = vpack.c.bf16 %v2510_v11, %v2506_v60  ;;  %v7275_v18 = vpack.c.bf16 %v2512_v12, %v2508_v61 }
 0x1e5   :  { %v2567_v20 = vpack.c.bf16 %v2511_v13, %v2507_v3  ;;  %v7280_v21 = vpack.c.bf16 %v2513_v14, %v2509_v10  ;;  %v1987_v22 = vpop.f32.mrb[8].mxu0  ;;  %v2439_v23 = vpop.f32.mrb[8].mxu1  ;;  %3500 = vmatpush1.bf16.msra.mxu0 %v5987_v52  ;;  %3726 = vmatpush1.bf16.msra.mxu1 %v5990_v53  ;;  %v6005_v53 = vld [vmem:[%s7917_s3 + $0x280] ss:$16 sps:$4 sm:$0xff]  }
 0x1e6   :  { %v5134_v24 = vadd.f32 %v1987_v22, %v7211_v6  ;;  %v5166_v25 = vadd.f32 %v2439_v23, %v7215_v7  ;;  %v1989_v26 = vpop.f32.mrb[9].mxu0  ;;  %v2441_v27 = vpop.f32.mrb[9].mxu1  ;;  %3501 = vmatprep.subr.bf16.mxu0 %v5995_v58  ;;  %3727 = vmatprep.subr.bf16.mxu1 %v5998_v59 }
 0x1e7   :  { %v5135_v29 = vadd.f32 %v1989_v26, %v7219_v8  ;;  %v5167_v30 = vadd.f32 %v2441_v27, %v7223_v9  ;;  %v1991_v31 = vpop.f32.mrb[10].mxu0  ;;  %v2443_v32 = vpop.f32.mrb[10].mxu1  ;;  %3426 = vmatprep.mubr.bf16.mxu0 %v2567_v20  ;;  %3652 = vmatprep.mubr.bf16.mxu1 %v2567_v20 }
 0x1e8   :  { %v5136_v35 = vadd.f32 %v1991_v31, %v7211_v6  ;;  %v5168_v36 = vadd.f32 %v2443_v32, %v7215_v7  ;;  %v1993_v38 = vpop.f32.mrb[11].mxu0  ;;  %v2445_v39 = vpop.f32.mrb[11].mxu1  ;;  %3427 = vmatmul.mubr.bf16.gmra.mrb[36].mxu0 %v2566_v17  ;;  %3653 = vmatmul.mubr.bf16.gmra.mrb[36].mxu1 %v2566_v17  ;;  %v2514_v42 = vmax.f32 %v5134_v24, 0.0  ;;  %v2516_v43 = vmax.f32 %v5166_v25, 0.0  ;;  %v6014_v17 = vld [vmem:[%s7917_s3 + $0x2a8] ss:$16 sps:$4 sm:$0xff]  }
 0x1e9   :  { %v5137_v44 = vadd.f32 %v1993_v38, %v7219_v8  ;;  %v5169_v45 = vadd.f32 %v2445_v39, %v7223_v9  ;;  %3502 = vmatpush1.bf16.msra.mxu0 %v5993_v15  ;;  %3728 = vmatpush1.bf16.msra.mxu1 %v5996_v16  ;;  %v2515_v49 = vmax.f32 %v5135_v29, 0.0  ;;  %v2517_v50 = vmax.f32 %v5167_v30, 0.0  ;;  %v6011_v16 = vld [vmem:[%s7917_s3 + $0x2a0] ss:$16 sps:$4 sm:$0xff]   ;;  %v6019_v24 = vld [vmem:[%s7917_s3 + $0x2c4] ss:$16 sps:$4 sm:$0xff]  }
 0x1ea   :  { %v2518_v47 = vmax.f32 %v5136_v35, 0.0  ;;  %v2520_v48 = vmax.f32 %v5168_v36, 0.0  ;;  %3503 = vmatprep.subr.bf16.mxu0 %v6001_v19  ;;  %3729 = vmatprep.subr.bf16.mxu1 %v6004_v28  ;;  %v6022_v25 = vld [vmem:[%s7917_s3 + $0x2cc] ss:$16 sps:$4 sm:$0xff]   ;;  %v6017_v36 = vld [vmem:[%s7917_s3 + $0x2c0] ss:$16 sps:$4 sm:$0xff]  }
 0x1eb   :  { %v2519_v51 = vmax.f32 %v5137_v44, 0.0  ;;  %v2521_v52 = vmax.f32 %v5169_v45, 0.0  ;;  %v6020_v38 = vld [vmem:[%s7917_s3 + $0x2c8] ss:$16 sps:$4 sm:$0xff]  }
 0x1ec   :  { %v2570_v55 = vpack.c.bf16 %v2518_v47, %v2514_v42  ;;  %v7311_v56 = vpack.c.bf16 %v2520_v48, %v2516_v43  ;;  %v6025_v42 = vld [vmem:[%s7917_s3 + $0x2e4] ss:$16 sps:$4 sm:$0xff]   ;;  %v6028_v47 = vld [vmem:[%s7917_s3 + $0x2ec] ss:$16 sps:$4 sm:$0xff]  }
 0x1ed   :  { %v2571_v58 = vpack.c.bf16 %v2519_v51, %v2515_v49  ;;  %v7316_v59 = vpack.c.bf16 %v2521_v52, %v2517_v50  ;;  %v1997_v60 = vpop.f32.mrb[12].mxu0  ;;  %v2449_v61 = vpop.f32.mrb[12].mxu1  ;;  %3504 = vmatpush1.bf16.msra.mxu0 %v5999_v33  ;;  %3730 = vmatpush1.bf16.msra.mxu1 %v6002_v34 }
 0x1ee   :  { %v5138_v63 = vadd.f32 %v1997_v60, %v7211_v6  ;;  %v5170_v3 = vadd.f32 %v2449_v61, %v7215_v7  ;;  %v1999_v10 = vpop.f32.mrb[13].mxu0  ;;  %v2451_v11 = vpop.f32.mrb[13].mxu1  ;;  %3505 = vmatprep.subr.bf16.mxu0 %v6007_v41  ;;  %3731 = vmatprep.subr.bf16.mxu1 %v6010_v46 }
 0x1ef   :  { %v5139_v12 = vadd.f32 %v1999_v10, %v7219_v8  ;;  %v5171_v13 = vadd.f32 %v2451_v11, %v7223_v9  ;;  %v2001_v14 = vpop.f32.mrb[14].mxu0  ;;  %v2453_v15 = vpop.f32.mrb[14].mxu1  ;;  %3436 = vmatprep.mubr.bf16.mxu0 %v2571_v58  ;;  %3662 = vmatprep.mubr.bf16.mxu1 %v2571_v58  ;;  %v6026_v58 = vld [vmem:[%s7917_s3 + $0x2e8] ss:$16 sps:$4 sm:$0xff]   ;;  %v6034_v10 = vld [vmem:[%s7917_s3 + $0x30c] ss:$16 sps:$4 sm:$0xff]  }
 0x1f0   :  { %v5140_v19 = vadd.f32 %v2001_v14, %v7211_v6  ;;  %v5172_v20 = vadd.f32 %v2453_v15, %v7215_v7  ;;  %v2003_v22 = vpop.f32.mrb[15].mxu0  ;;  %v2455_v23 = vpop.f32.mrb[15].mxu1  ;;  %3437 = vmatmul.mubr.bf16.gmra.mrb[40].mxu0 %v2570_v55  ;;  %3663 = vmatmul.mubr.bf16.gmra.mrb[40].mxu1 %v2570_v55  ;;  %v2522_v26 = vmax.f32 %v5138_v63, 0.0  ;;  %v2524_v27 = vmax.f32 %v5170_v3, 0.0  ;;  %v6031_v3 = vld [vmem:[%s7917_s3 + $0x304] ss:$16 sps:$4 sm:$0xff]  }
 0x1f1   :  { %v5141_v28 = vadd.f32 %v2003_v22, %v7219_v8  ;;  %v5173_v29 = vadd.f32 %v2455_v23, %v7223_v9  ;;  %3506 = vmatpush1.bf16.msra.mxu0 %v6005_v53  ;;  %3732 = vmatpush1.bf16.msra.mxu1 %v6008_v54  ;;  %v2523_v32 = vmax.f32 %v5139_v12, 0.0  ;;  %v2525_v33 = vmax.f32 %v5171_v13, 0.0  ;;  %v6029_v23 = vld [vmem:[%s7917_s3 + $0x300] ss:$16 sps:$4 sm:$0xff]  }
 0x1f2   :  { %v2526_v30 = vmax.f32 %v5140_v19, 0.0  ;;  %v2528_v31 = vmax.f32 %v5172_v20, 0.0  ;;  %3507 = vmatprep.subr.bf16.mxu0 %v6013_v57  ;;  %3733 = vmatprep.subr.bf16.mxu1 %v6016_v62  ;;  %v6023_v57 = vld [vmem:[%s7917_s3 + $0x2e0] ss:$16 sps:$4 sm:$0xff]  }
 0x1f3   :  { %v2527_v34 = vmax.f32 %v5141_v28, 0.0  ;;  %v2529_v35 = vmax.f32 %v5173_v29, 0.0 }
 0x1f4   :  { %v2574_v39 = vpack.c.bf16 %v2526_v30, %v2522_v26  ;;  %v7347_v41 = vpack.c.bf16 %v2528_v31, %v2524_v27  ;;  %v6037_v27 = vld [vmem:[%s7917_s3 + $0x324] ss:$16 sps:$4 sm:$0xff]  }
 0x1f5   :  { %v2575_v43 = vpack.c.bf16 %v2527_v34, %v2523_v32  ;;  %v7352_v44 = vpack.c.bf16 %v2529_v35, %v2525_v33  ;;  %v2007_v45 = vpop.f32.mrb[16].mxu0  ;;  %v2459_v46 = vpop.f32.mrb[16].mxu1  ;;  %3508 = vmatpush1.bf16.msra.mxu0 %v6011_v16  ;;  %3734 = vmatpush1.bf16.msra.mxu1 %v6014_v17  ;;  %v6040_v32 = vld [vmem:[%s7917_s3 + $0x32c] ss:$16 sps:$4 sm:$0xff]  }
 0x1f6   :  { %v5142_v48 = vadd.f32 %v2007_v45, %v7211_v6  ;;  %v5174_v49 = vadd.f32 %v2459_v46, %v7215_v7  ;;  %v2009_v50 = vpop.f32.mrb[17].mxu0  ;;  %v2461_v51 = vpop.f32.mrb[17].mxu1  ;;  %3509 = vmatprep.subr.bf16.mxu0 %v6019_v24  ;;  %3735 = vmatprep.subr.bf16.mxu1 %v6022_v25  ;;  %v6032_v24 = vld [vmem:[%s7917_s3 + $0x308] ss:$16 sps:$4 sm:$0xff]   ;;  %v6035_v45 = vld [vmem:[%s7917_s3 + $0x320] ss:$16 sps:$4 sm:$0xff]  }
 0x1f7   :  { %v5143_v52 = vadd.f32 %v2009_v50, %v7219_v8  ;;  %v5175_v53 = vadd.f32 %v2461_v51, %v7223_v9  ;;  %v2011_v54 = vpop.f32.mrb[18].mxu0  ;;  %v2463_v55 = vpop.f32.mrb[18].mxu1  ;;  %3446 = vmatprep.mubr.bf16.mxu0 %v2575_v43  ;;  %3672 = vmatprep.mubr.bf16.mxu1 %v2575_v43  ;;  %v6038_v50 = vld [vmem:[%s7917_s3 + $0x328] ss:$16 sps:$4 sm:$0xff]  }
 0x1f8   :  { %v5144_v60 = vadd.f32 %v2011_v54, %v7211_v6  ;;  %v5176_v61 = vadd.f32 %v2463_v55, %v7215_v7  ;;  %v2013_v62 = vpop.f32.mrb[19].mxu0  ;;  %v2465_v63 = vpop.f32.mrb[19].mxu1  ;;  %3447 = vmatmul.mubr.bf16.gmra.mrb[44].mxu0 %v2574_v39  ;;  %3673 = vmatmul.mubr.bf16.gmra.mrb[44].mxu1 %v2574_v39  ;;  %v2530_v11 = vmax.f32 %v5142_v48, 0.0  ;;  %v2532_v12 = vmax.f32 %v5174_v49, 0.0 }
 0x1f9   :  { %v5145_v13 = vadd.f32 %v2013_v62, %v7219_v8  ;;  %v5177_v14 = vadd.f32 %v2465_v63, %v7223_v9  ;;  %3510 = vmatpush1.bf16.msra.mxu0 %v6017_v36  ;;  %3736 = vmatpush1.bf16.msra.mxu1 %v6020_v38  ;;  %v2531_v15 = vmax.f32 %v5143_v52, 0.0  ;;  %v2533_v16 = vmax.f32 %v5175_v53, 0.0  ;;  %v6043_v53 = vld [vmem:[%s7917_s3 + $0x344] ss:$16 sps:$4 sm:$0xff]  }
 0x1fa   :  { %v2534_v17 = vmax.f32 %v5144_v60, 0.0  ;;  %v2536_v19 = vmax.f32 %v5176_v61, 0.0  ;;  %3511 = vmatprep.subr.bf16.mxu0 %v6025_v42  ;;  %3737 = vmatprep.subr.bf16.mxu1 %v6028_v47  ;;  %v6046_v60 = vld [vmem:[%s7917_s3 + $0x34c] ss:$16 sps:$4 sm:$0xff]  }
 0x1fb   :  { %v2535_v20 = vmax.f32 %v5145_v13, 0.0  ;;  %v2537_v22 = vmax.f32 %v5177_v14, 0.0 }
 0x1fc   :  { %v2578_v25 = vpack.c.bf16 %v2534_v17, %v2530_v11  ;;  %v7383_v26 = vpack.c.bf16 %v2536_v19, %v2532_v12  ;;  %v6044_v17 = vld [vmem:[%s7917_s3 + $0x348] ss:$16 sps:$4 sm:$0xff]  }
 0x1fd   :  { %v2579_v28 = vpack.c.bf16 %v2535_v20, %v2531_v15  ;;  %v7388_v29 = vpack.c.bf16 %v2537_v22, %v2533_v16  ;;  %v2017_v30 = vpop.f32.mrb[20].mxu0  ;;  %v2469_v31 = vpop.f32.mrb[20].mxu1  ;;  %3512 = vmatpush1.bf16.msra.mxu0 %v6023_v57  ;;  %3738 = vmatpush1.bf16.msra.mxu1 %v6026_v58  ;;  %v6041_v16 = vld [vmem:[%s7917_s3 + $0x340] ss:$16 sps:$4 sm:$0xff]  }
 0x1fe   :  { %v5146_v33 = vadd.f32 %v2017_v30, %v7211_v6  ;;  %v5178_v34 = vadd.f32 %v2469_v31, %v7215_v7  ;;  %v2019_v35 = vpop.f32.mrb[21].mxu0  ;;  %v2471_v36 = vpop.f32.mrb[21].mxu1  ;;  %3513 = vmatprep.subr.bf16.mxu0 %v6031_v3  ;;  %3739 = vmatprep.subr.bf16.mxu1 %v6034_v10 }
 0x1ff   :  { %v5147_v38 = vadd.f32 %v2019_v35, %v7219_v8  ;;  %v5179_v39 = vadd.f32 %v2471_v36, %v7223_v9  ;;  %v2021_v42 = vpop.f32.mrb[22].mxu0  ;;  %v2473_v43 = vpop.f32.mrb[22].mxu1  ;;  %3456 = vmatprep.mubr.bf16.mxu0 %v2579_v28  ;;  %3682 = vmatprep.mubr.bf16.mxu1 %v2579_v28 }
 0x200   :  { %v5148_v46 = vadd.f32 %v2021_v42, %v7211_v6  ;;  %v5180_v47 = vadd.f32 %v2473_v43, %v7215_v7  ;;  %v2023_v48 = vpop.f32.mrb[23].mxu0  ;;  %v2475_v49 = vpop.f32.mrb[23].mxu1  ;;  %3457 = vmatmul.mubr.bf16.gmra.mrb[48].mxu0 %v2578_v25  ;;  %3683 = vmatmul.mubr.bf16.gmra.mrb[48].mxu1 %v2578_v25  ;;  %v2538_v54 = vmax.f32 %v5146_v33, 0.0  ;;  %v2540_v55 = vmax.f32 %v5178_v34, 0.0  ;;  %v6052_v25 = vld [vmem:[%s7917_s3 + $0x36c] ss:$16 sps:$4 sm:$0xff]  }
 0x201   :  { %v5149_v51 = vadd.f32 %v2023_v48, %v7219_v8  ;;  %v5181_v52 = vadd.f32 %v2475_v49, %v7223_v9  ;;  %3514 = vmatpush1.bf16.msra.mxu0 %v6029_v23  ;;  %3740 = vmatpush1.bf16.msra.mxu1 %v6032_v24  ;;  %v2539_v61 = vmax.f32 %v5147_v38, 0.0  ;;  %v2541_v62 = vmax.f32 %v5179_v39, 0.0  ;;  %v6049_v24 = vld [vmem:[%s7917_s3 + $0x364] ss:$16 sps:$4 sm:$0xff]   ;;  %v6047_v39 = vld [vmem:[%s7917_s3 + $0x360] ss:$16 sps:$4 sm:$0xff]  }
 0x202   :  { %v2542_v57 = vmax.f32 %v5148_v46, 0.0  ;;  %v2544_v58 = vmax.f32 %v5180_v47, 0.0  ;;  %3515 = vmatprep.subr.bf16.mxu0 %v6037_v27  ;;  %3741 = vmatprep.subr.bf16.mxu1 %v6040_v32  ;;  %v6050_v42 = vld [vmem:[%s7917_s3 + $0x368] ss:$16 sps:$4 sm:$0xff]   ;;  %v6055_v43 = vld [vmem:[%s7917_s3 + $0x384] ss:$16 sps:$4 sm:$0xff]  }
 0x203   :  { %v2543_v63 = vmax.f32 %v5149_v51, 0.0  ;;  %v2545_v3 = vmax.f32 %v5181_v52, 0.0  ;;  %v6058_v49 = vld [vmem:[%s7917_s3 + $0x38c] ss:$16 sps:$4 sm:$0xff]  }
 0x204   :  { %v2582_v10 = vpack.c.bf16 %v2542_v57, %v2538_v54  ;;  %v7413_v11 = vpack.c.bf16 %v2544_v58, %v2540_v55 }
 0x205   :  { %v2583_v12 = vpack.c.bf16 %v2543_v63, %v2539_v61  ;;  %v7415_v13 = vpack.c.bf16 %v2545_v3, %v2541_v62  ;;  %v2027_v14 = vpop.f32.mrb[24].mxu0  ;;  %v2479_v15 = vpop.f32.mrb[24].mxu1  ;;  %3516 = vmatpush1.bf16.msra.mxu0 %v6035_v45  ;;  %3742 = vmatpush1.bf16.msra.mxu1 %v6038_v50  ;;  %v6053_v62 = vld [vmem:[%s7917_s3 + $0x380] ss:$16 sps:$4 sm:$0xff]   ;;  %v6056_v63 = vld [vmem:[%s7917_s3 + $0x388] ss:$16 sps:$4 sm:$0xff]  }
 0x206   :  { %v5150_v19 = vadd.f32 %v2027_v14, %v7211_v6  ;;  %v5182_v20 = vadd.f32 %v2479_v15, %v7215_v7  ;;  %v2029_v22 = vpop.f32.mrb[25].mxu0  ;;  %v2481_v23 = vpop.f32.mrb[25].mxu1  ;;  %3517 = vmatprep.subr.bf16.mxu0 %v6043_v53  ;;  %3743 = vmatprep.subr.bf16.mxu1 %v6046_v60  ;;  %v6061_v15 = vld [vmem:[%s7917_s3 + $0x3a4] ss:$16 sps:$4 sm:$0xff]  }
 0x207   :  { %v5151_v27 = vadd.f32 %v2029_v22, %v7219_v8  ;;  %v5183_v28 = vadd.f32 %v2481_v23, %v7223_v9  ;;  %v2031_v30 = vpop.f32.mrb[26].mxu0  ;;  %v2483_v31 = vpop.f32.mrb[26].mxu1  ;;  %3466 = vmatprep.mubr.bf16.mxu0 %v2583_v12  ;;  %3692 = vmatprep.mubr.bf16.mxu1 %v2583_v12 }
 0x208   :  { %v5152_v32 = vadd.f32 %v2031_v30, %v7211_v6  ;;  %v5184_v33 = vadd.f32 %v2483_v31, %v7215_v7  ;;  %v2033_v34 = vpop.f32.mrb[27].mxu0  ;;  %v2485_v35 = vpop.f32.mrb[27].mxu1  ;;  %3467 = vmatmul.mubr.bf16.gmra.mrb[52].mxu0 %v2582_v10  ;;  %3693 = vmatmul.mubr.bf16.gmra.mrb[52].mxu1 %v2582_v10  ;;  %v2546_v45 = vmax.f32 %v5150_v19, 0.0  ;;  %v2548_v46 = vmax.f32 %v5182_v20, 0.0  ;;  %v6059_v31 = vld [vmem:[%s7917_s3 + $0x3a0] ss:$16 sps:$4 sm:$0xff]  }
 0x209   :  { %v5153_v36 = vadd.f32 %v2033_v34, %v7219_v8  ;;  %v5185_v38 = vadd.f32 %v2485_v35, %v7223_v9  ;;  %3518 = vmatpush1.bf16.msra.mxu0 %v6041_v16  ;;  %3744 = vmatpush1.bf16.msra.mxu1 %v6044_v17  ;;  %v2547_v50 = vmax.f32 %v5151_v27, 0.0  ;;  %v2549_v51 = vmax.f32 %v5183_v28, 0.0  ;;  %v6064_v16 = vld [vmem:[%s7917_s3 + $0x3ac] ss:$16 sps:$4 sm:$0xff]  }
 0x20a   :  { %v2550_v47 = vmax.f32 %v5152_v32, 0.0  ;;  %v2552_v48 = vmax.f32 %v5184_v33, 0.0  ;;  %3519 = vmatprep.subr.bf16.mxu0 %v6049_v24  ;;  %3745 = vmatprep.subr.bf16.mxu1 %v6052_v25 }
 0x20b   :  { %v2551_v52 = vmax.f32 %v5153_v36, 0.0  ;;  %v2553_v53 = vmax.f32 %v5185_v38, 0.0 }
 0x20c   :  { %v2586_v54 = vpack.c.bf16 %v2550_v47, %v2546_v45  ;;  %v7449_v55 = vpack.c.bf16 %v2552_v48, %v2548_v46  ;;  %v6065_v47 = vld [vmem:[%s7917_s3 + $0x3c0] ss:$16 sps:$4 sm:$0xff]   ;;  %v6068_v48 = vld [vmem:[%s7917_s3 + $0x3c8] ss:$16 sps:$4 sm:$0xff]  }
 0x20d   :  { %v2587_v57 = vpack.c.bf16 %v2551_v52, %v2547_v50  ;;  %v7451_v58 = vpack.c.bf16 %v2553_v53, %v2549_v51  ;;  %v2037_v60 = vpop.f32.mrb[28].mxu0  ;;  %v2489_v61 = vpop.f32.mrb[28].mxu1  ;;  %3520 = vmatpush1.bf16.msra.mxu0 %v6047_v39  ;;  %3746 = vmatpush1.bf16.msra.mxu1 %v6050_v42  ;;  %v6076_v50 = vld [vmem:[%s7917_s3 + $0x3ec] ss:$16 sps:$4 sm:$0xff]   ;;  %v6071_v51 = vld [vmem:[%s7917_s3 + $0x3e0] ss:$16 sps:$4 sm:$0xff]  }
 0x20e   :  { %v5154_v3 = vadd.f32 %v2037_v60, %v7211_v6  ;;  %v5186_v10 = vadd.f32 %v2489_v61, %v7215_v7  ;;  %v2039_v12 = vpop.f32.mrb[29].mxu0  ;;  %v2491_v14 = vpop.f32.mrb[29].mxu1  ;;  %3521 = vmatprep.subr.bf16.mxu0 %v6055_v43  ;;  %3747 = vmatprep.subr.bf16.mxu1 %v6058_v49  ;;  %v6073_v49 = vld [vmem:[%s7917_s3 + $0x3e4] ss:$16 sps:$4 sm:$0xff]   ;;  %v6074_v52 = vld [vmem:[%s7917_s3 + $0x3e8] ss:$16 sps:$4 sm:$0xff]  }
 0x20f   :  { %v5155_v17 = vadd.f32 %v2039_v12, %v7219_v8  ;;  %v5187_v19 = vadd.f32 %v2491_v14, %v7223_v9  ;;  %v2041_v20 = vpop.f32.mrb[30].mxu0  ;;  %v2493_v22 = vpop.f32.mrb[30].mxu1  ;;  %3476 = vmatprep.mubr.bf16.mxu0 %v2587_v57  ;;  %3702 = vmatprep.mubr.bf16.mxu1 %v2587_v57  ;;  %v6077_v53 = vld [vmem:[%s7919_s5 + $0x40] sm:$0xff]   ;;  %v6081_v60 = vld [vmem:[%s7919_s5 + $0x48] sm:$0xff]   ;;  %v6089_v12 = vld [vmem:[%s7919_s5 + $0x58] sm:$0xff]  }
 0x210   :  { %v5156_v23 = vadd.f32 %v2041_v20, %v7211_v6  ;;  %v5188_v24 = vadd.f32 %v2493_v22, %v7215_v7  ;;  %v2043_v25 = vpop.f32.mrb[31].mxu0  ;;  %v2495_v27 = vpop.f32.mrb[31].mxu1  ;;  %3477 = vmatmul.mubr.bf16.gmra.mrb[56].mxu0 %v2586_v54  ;;  %3703 = vmatmul.mubr.bf16.gmra.mrb[56].mxu1 %v2586_v54  ;;  %v6062_v6 = vld [vmem:[%s7917_s3 + $0x3a8] ss:$16 sps:$4 sm:$0xff]   ;;  %v6067_v7 = vld [vmem:[%s7917_s3 + $0x3c4] ss:$16 sps:$4 sm:$0xff]  }
 0x211   :  { %v5157_v28 = vadd.f32 %v2043_v25, %v7219_v8  ;;  %v5189_v30 = vadd.f32 %v2495_v27, %v7223_v9  ;;  %3522 = vmatpush1.bf16.msra.mxu0 %v6053_v62  ;;  %3748 = vmatpush1.bf16.msra.mxu1 %v6056_v63  ;;  %v2554_v32 = vmax.f32 %v5154_v3, 0.0  ;;  %v2556_v33 = vmax.f32 %v5186_v10, 0.0  ;;  %v6070_v9 = vld [vmem:[%s7917_s3 + $0x3cc] ss:$16 sps:$4 sm:$0xff]   ;;  %v6079_v54 = vld [vmem:[%s7919_s5 + $0xc0] sm:$0xff]   ;;  %v6085_v3 = vld [vmem:[%s7919_s5 + $0x50] sm:$0xff]  }
 0x212   :  { %v2558_v34 = vmax.f32 %v5156_v23, 0.0  ;;  %v2560_v8 = vmax.f32 %v5188_v24, 0.0  ;;  %3523 = vmatprep.subr.bf16.mxu0 %v6061_v15  ;;  %3749 = vmatprep.subr.bf16.mxu1 %v6064_v16  ;;  %v2555_v35 = vmax.f32 %v5155_v17, 0.0  ;;  %v2557_v36 = vmax.f32 %v5187_v19, 0.0  ;;  %v6080_v57 = vld [vmem:[%s7919_s5 + $0x80] sm:$0xff]   ;;  %v6083_v61 = vld [vmem:[%s7919_s5 + $0xc8] sm:$0xff]  }
 0x213   :  { %v2559_v38 = vmax.f32 %v5157_v28, 0.0  ;;  %v2561_v39 = vmax.f32 %v5189_v30, 0.0  ;;  %v6082_v62 = vld [vmem:[%s7919_s5 + $0x8] sm:$0xff]   ;;  %v6088_v10 = vld [vmem:[%s7919_s5 + $0x90] sm:$0xff]   ;;  %v6091_v14 = vld [vmem:[%s7919_s5 + $0xd8] sm:$0xff]  }
 0x214   :  { %v2590_v42 = vpack.c.bf16 %v2558_v34, %v2554_v32  ;;  %v7485_v43 = vpack.c.bf16 %v2560_v8, %v2556_v33  ;;  %v6084_v63 = vld [vmem:[%s7919_s5 + $0x88] sm:$0xff]   ;;  %v6090_v15 = vld [vmem:[%s7919_s5 + $0x18] sm:$0xff]   ;;  %v6093_v17 = vld [vmem:[%s7919_s5 + $0x60] sm:$0xff]  }
 0x215   :  { %v2591_v45 = vpack.c.bf16 %v2559_v38, %v2555_v35  ;;  %v7487_v46 = vpack.c.bf16 %v2561_v39, %v2557_v36  ;;  %3524 = vmatpush1.bf16.msra.mxu0 %v6059_v31  ;;  %3750 = vmatpush1.bf16.msra.mxu1 %v6062_v6  ;;  %v6092_v16 = vld [vmem:[%s7919_s5 + $0x98] sm:$0xff]   ;;  %v6096_v19 = vld [vmem:[%s7919_s5 + $0xa0] sm:$0xff]   ;;  %v6097_v20 = vld [vmem:[%s7919_s5 + $0x68] sm:$0xff]  }
 0x216   :  { %3525 = vmatprep.subr.bf16.mxu0 %v6067_v7  ;;  %3751 = vmatprep.subr.bf16.mxu1 %v6070_v9  ;;  %v6099_v22 = vld [vmem:[%s7919_s5 + $0xe8] sm:$0xff]   ;;  %v6101_v25 = vld [vmem:[%s7919_s5 + $0x70] sm:$0xff]  }
 0x217   :  { %3486 = vmatprep.mubr.bf16.mxu0 %v2591_v45  ;;  %3712 = vmatprep.mubr.bf16.mxu1 %v2591_v45  ;;  %v6098_v23 = vld [vmem:[%s7919_s5 + $0x28] sm:$0xff]   ;;  %v6104_v27 = vld [vmem:[%s7919_s5 + $0xb0] sm:$0xff]  }
 0x218   :  { %3487 = vmatmul.mubr.bf16.gmra.mrb[60].mxu0 %v2590_v42  ;;  %3713 = vmatmul.mubr.bf16.gmra.mrb[60].mxu1 %v2590_v42  ;;  %v6100_v24 = vld [vmem:[%s7919_s5 + $0xa8] sm:$0xff]  }
 0x219   :  { %3526 = vmatpush1.bf16.msra.mxu0 %v6065_v47  ;;  %3529 = vmatprep.mubr.bf16.mxu0 %v7244_v40 }
 0x21a   :  { %3752 = vmatpush1.bf16.msra.mxu1 %v6068_v48  ;;  %3755 = vmatprep.mubr.bf16.mxu1 %v7244_v40  ;;  %v6078_v40 = vld [vmem:[%s7919_s5] sm:$0xff]  }
 0x21b   :  { %3527 = vmatprep.subr.bf16.mxu0 %v6073_v49  ;;  %3753 = vmatprep.subr.bf16.mxu1 %v6076_v50 }
 0x21d   :  { %3528 = vmatpush1.bf16.msra.mxu0 %v6071_v51 }
 0x21e   :  { %3754 = vmatpush1.bf16.msra.mxu1 %v6074_v52  ;;  %4998 = vmatprep.subr.bf16.mxu0 %v6077_v53 }
 0x21f   :  { %5062 = vmatprep.subr.bf16.mxu1 %v6079_v54 }
 0x220   :  { %3530 = vmatmul.mubr.bf16.vlgmr.msra.gmra.mrb[32].mxu0 %v7239_v37 }
 0x221   :  { %3756 = vmatmul.mubr.bf16.vlgmr.msra.gmra.mrb[32].mxu1 %v7239_v37  ;;  %3539 = vmatprep.mubr.bf16.mxu0 %v7280_v21  ;;  %v6087_v37 = vld [vmem:[%s7919_s5 + $0xd0] sm:$0xff]  }
 0x222   :  { %3765 = vmatprep.mubr.bf16.mxu1 %v7280_v21  ;;  %4999 = vmatpush3.bf16.msra.mxu0 %v6078_v40  ;;  %v6086_v21 = vld [vmem:[%s7919_s5 + $0x10] sm:$0xff]  }
 0x223   :  { %5063 = vmatpush3.bf16.msra.mxu1 %v6080_v57  ;;  %5000 = vmatprep.subr.bf16.mxu0 %v6081_v60 }
 0x224   :  { %5064 = vmatprep.subr.bf16.mxu1 %v6083_v61 }
 0x226   :  { %5001 = vmatpush3.bf16.msra.mxu0 %v6082_v62 }
 0x227   :  { %5065 = vmatpush3.bf16.msra.mxu1 %v6084_v63  ;;  %5002 = vmatprep.subr.bf16.mxu0 %v6085_v3 }
 0x228   :  { %3540 = vmatmul.mubr.bf16.gmra.mrb[36].mxu0 %v7275_v18  ;;  %5066 = vmatprep.subr.bf16.mxu1 %v6087_v37 }
 0x229   :  { %3766 = vmatmul.mubr.bf16.gmra.mrb[36].mxu1 %v7275_v18  ;;  %3549 = vmatprep.mubr.bf16.mxu0 %v7316_v59  ;;  %v6095_v18 = vld [vmem:[%s7919_s5 + $0xe0] sm:$0xff]  }
 0x22a   :  { %3775 = vmatprep.mubr.bf16.mxu1 %v7316_v59  ;;  %5003 = vmatpush3.bf16.msra.mxu0 %v6086_v21  ;;  %v6094_v59 = vld [vmem:[%s7919_s5 + $0x20] sm:$0xff]  }
 0x22b   :  { %5067 = vmatpush3.bf16.msra.mxu1 %v6088_v10  ;;  %5004 = vmatprep.subr.bf16.mxu0 %v6089_v12 }
 0x22c   :  { %5068 = vmatprep.subr.bf16.mxu1 %v6091_v14 }
 0x22e   :  { %5005 = vmatpush3.bf16.msra.mxu0 %v6090_v15 }
 0x22f   :  { %5069 = vmatpush3.bf16.msra.mxu1 %v6092_v16  ;;  %5006 = vmatprep.subr.bf16.mxu0 %v6093_v17 }
 0x230   :  { %3550 = vmatmul.mubr.bf16.gmra.mrb[40].mxu0 %v7311_v56  ;;  %5070 = vmatprep.subr.bf16.mxu1 %v6095_v18 }
 0x231   :  { %3776 = vmatmul.mubr.bf16.gmra.mrb[40].mxu1 %v7311_v56  ;;  %3559 = vmatprep.mubr.bf16.mxu0 %v7352_v44  ;;  %v6103_v56 = vld [vmem:[%s7919_s5 + $0xf0] sm:$0xff]  }
 0x232   :  { %3785 = vmatprep.mubr.bf16.mxu1 %v7352_v44  ;;  %5007 = vmatpush3.bf16.msra.mxu0 %v6094_v59  ;;  %v6102_v44 = vld [vmem:[%s7919_s5 + $0x30] sm:$0xff]  }
 0x233   :  { %5071 = vmatpush3.bf16.msra.mxu1 %v6096_v19  ;;  %5008 = vmatprep.subr.bf16.mxu0 %v6097_v20 }
 0x234   :  { %5072 = vmatprep.subr.bf16.mxu1 %v6099_v22 }
 0x236   :  { %5009 = vmatpush3.bf16.msra.mxu0 %v6098_v23 }
 0x237   :  { %5073 = vmatpush3.bf16.msra.mxu1 %v6100_v24  ;;  %5010 = vmatprep.subr.bf16.mxu0 %v6101_v25 }
 0x238   :  { %3560 = vmatmul.mubr.bf16.gmra.mrb[44].mxu0 %v7347_v41  ;;  %5074 = vmatprep.subr.bf16.mxu1 %v6103_v56 }
 0x239   :  { %3786 = vmatmul.mubr.bf16.gmra.mrb[44].mxu1 %v7347_v41  ;;  %3569 = vmatprep.mubr.bf16.mxu0 %v7388_v29  ;;  %v6105_v41 = vld [vmem:[%s7919_s5 + $0x78] sm:$0xff]  }
 0x23a   :  { %3795 = vmatprep.mubr.bf16.mxu1 %v7388_v29  ;;  %5011 = vmatpush3.bf16.msra.mxu0 %v6102_v44  ;;  %v6106_v29 = vld [vmem:[%s7919_s5 + $0x38] sm:$0xff]  }
 0x23b   :  { %5075 = vmatpush3.bf16.msra.mxu1 %v6104_v27  ;;  %5012 = vmatprep.subr.bf16.mxu0 %v6105_v41 }
 0x23e   :  { %5013 = vmatpush3.bf16.msra.mxu0 %v6106_v29 }
 0x240   :  { %3570 = vmatmul.mubr.bf16.gmra.mrb[48].mxu0 %v7383_v26 }
 0x241   :  { %3796 = vmatmul.mubr.bf16.gmra.mrb[48].mxu1 %v7383_v26  ;;  %3579 = vmatprep.mubr.bf16.mxu0 %v7415_v13  ;;  %v6107_v26 = vld [vmem:[%s7919_s5 + $0xf8] sm:$0xff]  }
 0x242   :  { %3805 = vmatprep.mubr.bf16.mxu1 %v7415_v13  ;;  %5076 = vmatprep.subr.bf16.mxu1 %v6107_v26  ;;  %v2722_v13 = vld [vmem:[%s7920_s4] sm:$0xf] }
 0x243   :  { %v7648_v28 = vrot.slane %v2722_v13, %v295_v4  ;;  %v7652_v30 = vrot.slane %v2722_v13, %v303_v5 }
 0x248   :  { %3580 = vmatmul.mubr.bf16.gmra.mrb[52].mxu0 %v7413_v11 }
 0x249   :  { %3806 = vmatmul.mubr.bf16.gmra.mrb[52].mxu1 %v7413_v11  ;;  %3589 = vmatprep.mubr.bf16.mxu0 %v7451_v58  ;;  %v6108_v11 = vld [vmem:[%s7919_s5 + $0xb8] sm:$0xff]  }
 0x24a   :  { %3815 = vmatprep.mubr.bf16.mxu1 %v7451_v58  ;;  %5077 = vmatpush3.bf16.msra.mxu1 %v6108_v11  ;;  %v7644_v58 = vrot.slane %v2722_v13, %v299_v2 }
 0x250   :  { %3590 = vmatmul.mubr.bf16.gmra.mrb[56].mxu0 %v7449_v55 }
 0x251   :  { %3816 = vmatmul.mubr.bf16.gmra.mrb[56].mxu1 %v7449_v55  ;;  %3599 = vmatprep.mubr.bf16.mxu0 %v7487_v46  ;;  %v7640_v55 = vrot.slane %v2722_v13, %v291_v1 }
 0x252   :  { %3825 = vmatprep.mubr.bf16.mxu1 %v7487_v46 }
 0x258   :  { %3600 = vmatmul.mubr.bf16.gmra.mrb[60].mxu0 %v7485_v43 }
 0x259   :  { %3826 = vmatmul.mubr.bf16.gmra.mrb[60].mxu1 %v7485_v43 }
 0x2f3   :  { %v3531_v31 = vpop.f32.mrb[32].mxu0 }
 0x2f4   :  { %v5190_v6 = vadd.f32 %v3531_v31, %v7640_v55  ;;  %v3757_v7 = vpop.f32.mrb[32].mxu1  ;;  %v3533_v32 = vpop.f32.mrb[33].mxu0 }
 0x2f5   :  { %v5222_v1 = vadd.f32 %v3757_v7, %v7644_v58  ;;  %v5191_v33 = vadd.f32 %v3533_v32, %v7648_v28  ;;  %v3759_v34 = vpop.f32.mrb[33].mxu1  ;;  %v3535_v2 = vpop.f32.mrb[34].mxu0 }
 0x2f6   :  { %v5223_v8 = vadd.f32 %v3759_v34, %v7652_v30  ;;  %v5192_v4 = vadd.f32 %v3535_v2, %v7640_v55  ;;  %v3761_v9 = vpop.f32.mrb[34].mxu1  ;;  %v3537_v35 = vpop.f32.mrb[35].mxu0  ;;  %v3836_v38 = vmax.f32 %v5190_v6, 0.0 }
 0x2f7   :  { %v5224_v0 = vadd.f32 %v3761_v9, %v7644_v58  ;;  %v5193_v5 = vadd.f32 %v3537_v35, %v7648_v28  ;;  %v3763_v36 = vpop.f32.mrb[35].mxu1  ;;  %v3838_v43 = vmax.f32 %v5222_v1, 0.0  ;;  %v3837_v45 = vmax.f32 %v5191_v33, 0.0 }
 0x2f8   :  { %v3840_v39 = vmax.f32 %v5192_v4, 0.0  ;;  %v5225_v42 = vadd.f32 %v3763_v36, %v7652_v30  ;;  %v3839_v48 = vmax.f32 %v5223_v8, 0.0 }
 0x2f9   :  { %v3842_v46 = vmax.f32 %v5224_v0, 0.0  ;;  %v3841_v47 = vmax.f32 %v5193_v5, 0.0 }
 0x2fa   :  { %v3900_v49 = vpack.c.bf16 %v3840_v39, %v3836_v38  ;;  %v3843_v50 = vmax.f32 %v5225_v42, 0.0 }
 0x2fb   :  { %v3902_v51 = vpack.c.bf16 %v3842_v46, %v3838_v43  ;;  %v3901_v52 = vpack.c.bf16 %v3841_v47, %v3837_v45  ;;  %v3541_v53 = vpop.f32.mrb[36].mxu0 }
 0x2fc   :  { %v3903_v54 = vpack.c.bf16 %v3843_v50, %v3839_v48  ;;  %v5194_v40 = vadd.f32 %v3541_v53, %v7640_v55  ;;  %v3767_v57 = vpop.f32.mrb[36].mxu1  ;;  %v3543_v60 = vpop.f32.mrb[37].mxu0 }
 0x2fd   :  { %v5226_v61 = vadd.f32 %v3767_v57, %v7644_v58  ;;  %v5195_v62 = vadd.f32 %v3543_v60, %v7648_v28  ;;  %v3769_v63 = vpop.f32.mrb[37].mxu1  ;;  %v3545_v3 = vpop.f32.mrb[38].mxu0  ;;  %4227 = vmatprep.mubr.bf16.mxu0 %v3901_v52 }
 0x2fe   :  { %v5227_v37 = vadd.f32 %v3769_v63, %v7652_v30  ;;  %v5196_v21 = vadd.f32 %v3545_v3, %v7640_v55  ;;  %v3771_v10 = vpop.f32.mrb[38].mxu1  ;;  %4324 = vmatprep.mubr.bf16.mxu1 %v3903_v54  ;;  %v3547_v12 = vpop.f32.mrb[39].mxu0  ;;  %4228 = vmatmul.mubr.bf16.vlgmr.msra.gmra.mrb[64].mxu0 %v3900_v49  ;;  %v3844_v17 = vmax.f32 %v5194_v40, 0.0 }
 0x2ff   :  { %v5228_v14 = vadd.f32 %v3771_v10, %v7644_v58  ;;  %v5197_v15 = vadd.f32 %v3547_v12, %v7648_v28  ;;  %v3773_v16 = vpop.f32.mrb[39].mxu1  ;;  %4325 = vmatmul.mubr.bf16.vlgmr.msra.gmra.mrb[64].mxu1 %v3902_v51  ;;  %v3846_v19 = vmax.f32 %v5226_v61, 0.0  ;;  %v3845_v20 = vmax.f32 %v5195_v62, 0.0 }
 0x300   :  { %v3848_v18 = vmax.f32 %v5196_v21, 0.0  ;;  %v5229_v59 = vadd.f32 %v3773_v16, %v7652_v30  ;;  %v3847_v24 = vmax.f32 %v5227_v37, 0.0 }
 0x301   :  { %v3850_v22 = vmax.f32 %v5228_v14, 0.0  ;;  %v3849_v23 = vmax.f32 %v5197_v15, 0.0 }
 0x302   :  { %v3904_v25 = vpack.c.bf16 %v3848_v18, %v3844_v17  ;;  %v3851_v56 = vmax.f32 %v5229_v59, 0.0 }
 0x303   :  { %v3906_v44 = vpack.c.bf16 %v3850_v22, %v3846_v19  ;;  %v3905_v27 = vpack.c.bf16 %v3849_v23, %v3845_v20  ;;  %v3551_v41 = vpop.f32.mrb[40].mxu0 }
 0x304   :  { %v3907_v26 = vpack.c.bf16 %v3851_v56, %v3847_v24  ;;  %v5198_v29 = vadd.f32 %v3551_v41, %v7640_v55  ;;  %v3777_v11 = vpop.f32.mrb[40].mxu1  ;;  %v3553_v13 = vpop.f32.mrb[41].mxu0 }
 0x305   :  { %v5230_v31 = vadd.f32 %v3777_v11, %v7644_v58  ;;  %v5199_v6 = vadd.f32 %v3553_v13, %v7648_v28  ;;  %v3779_v7 = vpop.f32.mrb[41].mxu1  ;;  %v3555_v32 = vpop.f32.mrb[42].mxu0  ;;  %4235 = vmatprep.mubr.bf16.mxu0 %v3905_v27 }
 0x306   :  { %v5231_v1 = vadd.f32 %v3779_v7, %v7652_v30  ;;  %v5200_v33 = vadd.f32 %v3555_v32, %v7640_v55  ;;  %v3781_v34 = vpop.f32.mrb[42].mxu1  ;;  %4332 = vmatprep.mubr.bf16.mxu1 %v3907_v26  ;;  %v3557_v2 = vpop.f32.mrb[43].mxu0  ;;  %4236 = vmatmul.mubr.bf16.gmra.mrb[68].mxu0 %v3904_v25  ;;  %v3852_v35 = vmax.f32 %v5198_v29, 0.0 }
 0x307   :  { %v5232_v8 = vadd.f32 %v3781_v34, %v7644_v58  ;;  %v5201_v4 = vadd.f32 %v3557_v2, %v7648_v28  ;;  %v3783_v9 = vpop.f32.mrb[43].mxu1  ;;  %4333 = vmatmul.mubr.bf16.gmra.mrb[68].mxu1 %v3906_v44  ;;  %v3854_v36 = vmax.f32 %v5230_v31, 0.0  ;;  %v3853_v38 = vmax.f32 %v5199_v6, 0.0 }
 0x308   :  { %v3856_v0 = vmax.f32 %v5200_v33, 0.0  ;;  %v5233_v5 = vadd.f32 %v3783_v9, %v7652_v30  ;;  %v3855_v43 = vmax.f32 %v5231_v1, 0.0 }
 0x309   :  { %v3858_v39 = vmax.f32 %v5232_v8, 0.0  ;;  %v3857_v42 = vmax.f32 %v5201_v4, 0.0 }
 0x30a   :  { %v3908_v45 = vpack.c.bf16 %v3856_v0, %v3852_v35  ;;  %v3859_v46 = vmax.f32 %v5233_v5, 0.0 }
 0x30b   :  { %v3910_v47 = vpack.c.bf16 %v3858_v39, %v3854_v36  ;;  %v3909_v48 = vpack.c.bf16 %v3857_v42, %v3853_v38  ;;  %v3561_v49 = vpop.f32.mrb[44].mxu0 }
 0x30c   :  { %v3911_v50 = vpack.c.bf16 %v3859_v46, %v3855_v43  ;;  %v5202_v51 = vadd.f32 %v3561_v49, %v7640_v55  ;;  %v3787_v52 = vpop.f32.mrb[44].mxu1  ;;  %v3563_v53 = vpop.f32.mrb[45].mxu0 }
 0x30d   :  { %v5234_v54 = vadd.f32 %v3787_v52, %v7644_v58  ;;  %v5203_v40 = vadd.f32 %v3563_v53, %v7648_v28  ;;  %v3789_v57 = vpop.f32.mrb[45].mxu1  ;;  %v3565_v60 = vpop.f32.mrb[46].mxu0  ;;  %4243 = vmatprep.mubr.bf16.mxu0 %v3909_v48 }
 0x30e   :  { %v5235_v61 = vadd.f32 %v3789_v57, %v7652_v30  ;;  %v5204_v62 = vadd.f32 %v3565_v60, %v7640_v55  ;;  %v3791_v63 = vpop.f32.mrb[46].mxu1  ;;  %4340 = vmatprep.mubr.bf16.mxu1 %v3911_v50  ;;  %v3567_v3 = vpop.f32.mrb[47].mxu0  ;;  %4244 = vmatmul.mubr.bf16.gmra.mrb[72].mxu0 %v3908_v45  ;;  %v3860_v12 = vmax.f32 %v5202_v51, 0.0 }
 0x30f   :  { %v5236_v37 = vadd.f32 %v3791_v63, %v7644_v58  ;;  %v5205_v21 = vadd.f32 %v3567_v3, %v7648_v28  ;;  %v3793_v10 = vpop.f32.mrb[47].mxu1  ;;  %4341 = vmatmul.mubr.bf16.gmra.mrb[72].mxu1 %v3910_v47  ;;  %v3862_v16 = vmax.f32 %v5234_v54, 0.0  ;;  %v3861_v17 = vmax.f32 %v5203_v40, 0.0 }
 0x310   :  { %v3864_v14 = vmax.f32 %v5204_v62, 0.0  ;;  %v5237_v15 = vadd.f32 %v3793_v10, %v7652_v30  ;;  %v3863_v19 = vmax.f32 %v5235_v61, 0.0 }
 0x311   :  { %v3866_v18 = vmax.f32 %v5236_v37, 0.0  ;;  %v3865_v59 = vmax.f32 %v5205_v21, 0.0 }
 0x312   :  { %v3912_v20 = vpack.c.bf16 %v3864_v14, %v3860_v12  ;;  %v3867_v22 = vmax.f32 %v5237_v15, 0.0 }
 0x313   :  { %v3914_v23 = vpack.c.bf16 %v3866_v18, %v3862_v16  ;;  %v3913_v24 = vpack.c.bf16 %v3865_v59, %v3861_v17  ;;  %v3571_v25 = vpop.f32.mrb[48].mxu0 }
 0x314   :  { %v3915_v56 = vpack.c.bf16 %v3867_v22, %v3863_v19  ;;  %v5206_v44 = vadd.f32 %v3571_v25, %v7640_v55  ;;  %v3797_v27 = vpop.f32.mrb[48].mxu1  ;;  %v3573_v41 = vpop.f32.mrb[49].mxu0 }
 0x315   :  { %v5238_v26 = vadd.f32 %v3797_v27, %v7644_v58  ;;  %v5207_v29 = vadd.f32 %v3573_v41, %v7648_v28  ;;  %v3799_v11 = vpop.f32.mrb[49].mxu1  ;;  %v3575_v13 = vpop.f32.mrb[50].mxu0  ;;  %4251 = vmatprep.mubr.bf16.mxu0 %v3913_v24 }
 0x316   :  { %v5239_v31 = vadd.f32 %v3799_v11, %v7652_v30  ;;  %v5208_v6 = vadd.f32 %v3575_v13, %v7640_v55  ;;  %v3801_v7 = vpop.f32.mrb[50].mxu1  ;;  %4348 = vmatprep.mubr.bf16.mxu1 %v3915_v56  ;;  %v3577_v32 = vpop.f32.mrb[51].mxu0  ;;  %4252 = vmatmul.mubr.bf16.gmra.mrb[76].mxu0 %v3912_v20  ;;  %v3868_v2 = vmax.f32 %v5206_v44, 0.0 }
 0x317   :  { %v5240_v1 = vadd.f32 %v3801_v7, %v7644_v58  ;;  %v5209_v33 = vadd.f32 %v3577_v32, %v7648_v28  ;;  %v3803_v34 = vpop.f32.mrb[51].mxu1  ;;  %4349 = vmatmul.mubr.bf16.gmra.mrb[76].mxu1 %v3914_v23  ;;  %v3870_v9 = vmax.f32 %v5238_v26, 0.0  ;;  %v3869_v35 = vmax.f32 %v5207_v29, 0.0 }
 0x318   :  { %v3872_v8 = vmax.f32 %v5208_v6, 0.0  ;;  %v5241_v4 = vadd.f32 %v3803_v34, %v7652_v30  ;;  %v3871_v36 = vmax.f32 %v5239_v31, 0.0 }
 0x319   :  { %v3874_v0 = vmax.f32 %v5240_v1, 0.0  ;;  %v3873_v5 = vmax.f32 %v5209_v33, 0.0 }
 0x31a   :  { %v3916_v38 = vpack.c.bf16 %v3872_v8, %v3868_v2  ;;  %v3875_v39 = vmax.f32 %v5241_v4, 0.0 }
 0x31b   :  { %v3918_v42 = vpack.c.bf16 %v3874_v0, %v3870_v9  ;;  %v3917_v43 = vpack.c.bf16 %v3873_v5, %v3869_v35  ;;  %v3581_v45 = vpop.f32.mrb[52].mxu0 }
 0x31c   :  { %v3919_v46 = vpack.c.bf16 %v3875_v39, %v3871_v36  ;;  %v5210_v47 = vadd.f32 %v3581_v45, %v7640_v55  ;;  %v3807_v48 = vpop.f32.mrb[52].mxu1  ;;  %v3583_v49 = vpop.f32.mrb[53].mxu0 }
 0x31d   :  { %v5242_v50 = vadd.f32 %v3807_v48, %v7644_v58  ;;  %v5211_v51 = vadd.f32 %v3583_v49, %v7648_v28  ;;  %v3809_v52 = vpop.f32.mrb[53].mxu1  ;;  %v3585_v53 = vpop.f32.mrb[54].mxu0  ;;  %4259 = vmatprep.mubr.bf16.mxu0 %v3917_v43 }
 0x31e   :  { %v5243_v54 = vadd.f32 %v3809_v52, %v7652_v30  ;;  %v5212_v40 = vadd.f32 %v3585_v53, %v7640_v55  ;;  %v3811_v57 = vpop.f32.mrb[54].mxu1  ;;  %4356 = vmatprep.mubr.bf16.mxu1 %v3919_v46  ;;  %v3587_v60 = vpop.f32.mrb[55].mxu0  ;;  %4260 = vmatmul.mubr.bf16.gmra.mrb[80].mxu0 %v3916_v38  ;;  %v3876_v3 = vmax.f32 %v5210_v47, 0.0 }
 0x31f   :  { %v5244_v61 = vadd.f32 %v3811_v57, %v7644_v58  ;;  %v5213_v62 = vadd.f32 %v3587_v60, %v7648_v28  ;;  %v3813_v63 = vpop.f32.mrb[55].mxu1  ;;  %4357 = vmatmul.mubr.bf16.gmra.mrb[80].mxu1 %v3918_v42  ;;  %v3878_v10 = vmax.f32 %v5242_v50, 0.0  ;;  %v3877_v12 = vmax.f32 %v5211_v51, 0.0 }
 0x320   :  { %v3880_v37 = vmax.f32 %v5212_v40, 0.0  ;;  %v5245_v21 = vadd.f32 %v3813_v63, %v7652_v30  ;;  %v3879_v16 = vmax.f32 %v5243_v54, 0.0 }
 0x321   :  { %v3882_v14 = vmax.f32 %v5244_v61, 0.0  ;;  %v3881_v15 = vmax.f32 %v5213_v62, 0.0 }
 0x322   :  { %v3920_v17 = vpack.c.bf16 %v3880_v37, %v3876_v3  ;;  %v3883_v18 = vmax.f32 %v5245_v21, 0.0 }
 0x323   :  { %v3922_v59 = vpack.c.bf16 %v3882_v14, %v3878_v10  ;;  %v3921_v19 = vpack.c.bf16 %v3881_v15, %v3877_v12  ;;  %v3591_v20 = vpop.f32.mrb[56].mxu0 }
 0x324   :  { %v3923_v22 = vpack.c.bf16 %v3883_v18, %v3879_v16  ;;  %v5214_v23 = vadd.f32 %v3591_v20, %v7640_v55  ;;  %v3817_v24 = vpop.f32.mrb[56].mxu1  ;;  %v3593_v25 = vpop.f32.mrb[57].mxu0 }
 0x325   :  { %v5246_v56 = vadd.f32 %v3817_v24, %v7644_v58  ;;  %v5215_v44 = vadd.f32 %v3593_v25, %v7648_v28  ;;  %v3819_v27 = vpop.f32.mrb[57].mxu1  ;;  %v3595_v41 = vpop.f32.mrb[58].mxu0  ;;  %4267 = vmatprep.mubr.bf16.mxu0 %v3921_v19 }
 0x326   :  { %v5247_v26 = vadd.f32 %v3819_v27, %v7652_v30  ;;  %v5216_v29 = vadd.f32 %v3595_v41, %v7640_v55  ;;  %v3821_v11 = vpop.f32.mrb[58].mxu1  ;;  %4364 = vmatprep.mubr.bf16.mxu1 %v3923_v22  ;;  %v3597_v13 = vpop.f32.mrb[59].mxu0  ;;  %4268 = vmatmul.mubr.bf16.gmra.mrb[84].mxu0 %v3920_v17  ;;  %v3884_v32 = vmax.f32 %v5214_v23, 0.0 }
 0x327   :  { %v5248_v31 = vadd.f32 %v3821_v11, %v7644_v58  ;;  %v5217_v6 = vadd.f32 %v3597_v13, %v7648_v28  ;;  %v3823_v7 = vpop.f32.mrb[59].mxu1  ;;  %4365 = vmatmul.mubr.bf16.gmra.mrb[84].mxu1 %v3922_v59  ;;  %v3886_v34 = vmax.f32 %v5246_v56, 0.0  ;;  %v3885_v2 = vmax.f32 %v5215_v44, 0.0 }
 0x328   :  { %v3888_v1 = vmax.f32 %v5216_v29, 0.0  ;;  %v5249_v33 = vadd.f32 %v3823_v7, %v7652_v30  ;;  %v3887_v9 = vmax.f32 %v5247_v26, 0.0 }
 0x329   :  { %v3890_v8 = vmax.f32 %v5248_v31, 0.0  ;;  %v3889_v4 = vmax.f32 %v5217_v6, 0.0 }
 0x32a   :  { %v3924_v35 = vpack.c.bf16 %v3888_v1, %v3884_v32  ;;  %v3891_v0 = vmax.f32 %v5249_v33, 0.0 }
 0x32b   :  { %v3926_v5 = vpack.c.bf16 %v3890_v8, %v3886_v34  ;;  %v3925_v36 = vpack.c.bf16 %v3889_v4, %v3885_v2  ;;  %v3601_v38 = vpop.f32.mrb[60].mxu0 }
 0x32c   :  { %v3927_v39 = vpack.c.bf16 %v3891_v0, %v3887_v9  ;;  %v5218_v42 = vadd.f32 %v3601_v38, %v7640_v55  ;;  %v3827_v43 = vpop.f32.mrb[60].mxu1  ;;  %v3603_v45 = vpop.f32.mrb[61].mxu0 }
 0x32d   :  { %v5250_v46 = vadd.f32 %v3827_v43, %v7644_v58  ;;  %v5219_v47 = vadd.f32 %v3603_v45, %v7648_v28  ;;  %v3829_v48 = vpop.f32.mrb[61].mxu1  ;;  %v3605_v49 = vpop.f32.mrb[62].mxu0  ;;  %4275 = vmatprep.mubr.bf16.mxu0 %v3925_v36 }
 0x32e   :  { %v5251_v50 = vadd.f32 %v3829_v48, %v7652_v30  ;;  %v5220_v51 = vadd.f32 %v3605_v49, %v7640_v55  ;;  %v3831_v52 = vpop.f32.mrb[62].mxu1  ;;  %4372 = vmatprep.mubr.bf16.mxu1 %v3927_v39  ;;  %v3607_v53 = vpop.f32.mrb[63].mxu0  ;;  %4276 = vmatmul.mubr.bf16.gmra.mrb[88].mxu0 %v3924_v35  ;;  %v3892_v60 = vmax.f32 %v5218_v42, 0.0 }
 0x32f   :  { %v5252_v54 = vadd.f32 %v3831_v52, %v7644_v58  ;;  %v5221_v40 = vadd.f32 %v3607_v53, %v7648_v28  ;;  %v3833_v57 = vpop.f32.mrb[63].mxu1  ;;  %4373 = vmatmul.mubr.bf16.gmra.mrb[88].mxu1 %v3926_v5  ;;  %v3894_v63 = vmax.f32 %v5250_v46, 0.0  ;;  %v3893_v3 = vmax.f32 %v5219_v47, 0.0 }
 0x330   :  { %v3896_v61 = vmax.f32 %v5220_v51, 0.0  ;;  %v5253_v62 = vadd.f32 %v3833_v57, %v7652_v30  ;;  %v3895_v10 = vmax.f32 %v5251_v50, 0.0  ;;  %v7721_v30 = vld [vmem:[%s7921_s6] ss:$0 sm:$0xff] }
 0x331   :  { %v3898_v37 = vmax.f32 %v5252_v54, 0.0  ;;  %v3897_v21 = vmax.f32 %v5221_v40, 0.0 }
 0x332   :  { %v3928_v55 = vpack.c.bf16 %v3896_v61, %v3892_v60  ;;  %v3899_v12 = vmax.f32 %v5253_v62, 0.0 }
 0x333   :  { %v3930_v14 = vpack.c.bf16 %v3898_v37, %v3894_v63  ;;  %v3929_v15 = vpack.c.bf16 %v3897_v21, %v3893_v3 }
 0x334   :  { %v3931_v16 = vpack.c.bf16 %v3899_v12, %v3895_v10 }
 0x335   :  { %4283 = vmatprep.mubr.bf16.mxu0 %v3929_v15 }
 0x336   :  { %4380 = vmatprep.mubr.bf16.mxu1 %v3931_v16  ;;  %4284 = vmatmul.mubr.bf16.gmra.mrb[92].mxu0 %v3928_v55 }
 0x337   :  { %4381 = vmatmul.mubr.bf16.gmra.mrb[92].mxu1 %v3930_v14 }
 0x3d1   :  { %v5014_v58 = vpop.f32.mrb[64].mxu0 }
 0x3d2   :  { %v5078_v28 = vpop.f32.mrb[64].mxu1  ;;  %v5015_v17 = vpop.f32.mrb[65].mxu0 }
 0x3d3   :  { %v5016_v18 = vadd.f32 %v5015_v17, %v5014_v58  ;;  %v5079_v59 = vpop.f32.mrb[65].mxu1  ;;  %v5017_v19 = vpop.f32.mrb[66].mxu0 }
 0x3d4   :  { %v5080_v20 = vadd.f32 %v5079_v59, %v5078_v28  ;;  %v5081_v22 = vpop.f32.mrb[66].mxu1  ;;  %v5018_v23 = vpop.f32.mrb[67].mxu0 }
 0x3d5   :  { %v4230_v24 = vadd.f32 %v5016_v18, %v7721_v30  ;;  %v5019_v25 = vadd.f32 %v5018_v23, %v5017_v19  ;;  %v5082_v56 = vpop.f32.mrb[67].mxu1 }
 0x3d6   :  { %v5083_v44 = vadd.f32 %v5082_v56, %v5081_v22 }
 0x3d7   :  { %v4233_v27 = vadd.f32 %v5019_v25, %v7721_v30  ;;  %v7725_v41 = vadd.f32 %v5080_v20, %v4230_v24 }
 0x3d9   :  { %v5020_v26 = vpop.f32.mrb[68].mxu0  ;;  %4389 = vmax.xlane.f32.xlu0 %v7725_v41  ;;  %v7728_v29 = vadd.f32 %v5083_v44, %v4233_v27 }
 0x3da   :  { %v5084_v11 = vpop.f32.mrb[68].mxu1  ;;  %v5021_v13 = vpop.f32.mrb[69].mxu0 }
 0x3db   :  { %v5022_v31 = vadd.f32 %v5021_v13, %v5020_v26  ;;  %v5085_v6 = vpop.f32.mrb[69].mxu1  ;;  %v5023_v7 = vpop.f32.mrb[70].mxu0 }
 0x3dc   :  { %v5086_v32 = vadd.f32 %v5085_v6, %v5084_v11  ;;  %v5087_v1 = vpop.f32.mrb[70].mxu1  ;;  %v5024_v33 = vpop.f32.mrb[71].mxu0 }
 0x3dd   :  { %v4238_v34 = vadd.f32 %v5022_v31, %v7721_v30  ;;  %v5025_v2 = vadd.f32 %v5024_v33, %v5023_v7  ;;  %v5088_v8 = vpop.f32.mrb[71].mxu1  ;;  %4391 = vmax.xlane.f32.xlu0 %v7728_v29 }
 0x3de   :  { %v5089_v4 = vadd.f32 %v5088_v8, %v5087_v1 }
 0x3df   :  { %v4241_v9 = vadd.f32 %v5025_v2, %v7721_v30  ;;  %v7733_v35 = vadd.f32 %v5086_v32, %v4238_v34 }
 0x3e1   :  { %v5026_v0 = vpop.f32.mrb[72].mxu0  ;;  %4393 = vmax.xlane.f32.xlu1 %v7733_v35  ;;  %v7736_v5 = vadd.f32 %v5089_v4, %v4241_v9 }
 0x3e2   :  { %v5090_v36 = vpop.f32.mrb[72].mxu1  ;;  %v5027_v38 = vpop.f32.mrb[73].mxu0 }
 0x3e3   :  { %v5028_v39 = vadd.f32 %v5027_v38, %v5026_v0  ;;  %v5091_v42 = vpop.f32.mrb[73].mxu1  ;;  %v5029_v43 = vpop.f32.mrb[74].mxu0 }
 0x3e4   :  { %v5092_v45 = vadd.f32 %v5091_v42, %v5090_v36  ;;  %v5093_v46 = vpop.f32.mrb[74].mxu1  ;;  %v5030_v47 = vpop.f32.mrb[75].mxu0 }
 0x3e5   :  { %v4246_v48 = vadd.f32 %v5028_v39, %v7721_v30  ;;  %v5031_v49 = vadd.f32 %v5030_v47, %v5029_v43  ;;  %v5094_v50 = vpop.f32.mrb[75].mxu1  ;;  %4395 = vmax.xlane.f32.xlu1 %v7736_v5 }
 0x3e6   :  { %v5095_v51 = vadd.f32 %v5094_v50, %v5093_v46 }
 0x3e7   :  { %v4249_v52 = vadd.f32 %v5031_v49, %v7721_v30  ;;  %v7741_v53 = vadd.f32 %v5092_v45, %v4246_v48 }
 0x3e9   :  { %v5032_v54 = vpop.f32.mrb[76].mxu0  ;;  %4397 = vmax.xlane.f32.xlu0 %v7741_v53  ;;  %v7744_v40 = vadd.f32 %v5095_v51, %v4249_v52 }
 0x3ea   :  { %v5096_v57 = vpop.f32.mrb[76].mxu1  ;;  %v5033_v60 = vpop.f32.mrb[77].mxu0 }
 0x3eb   :  { %v5034_v61 = vadd.f32 %v5033_v60, %v5032_v54  ;;  %v5097_v62 = vpop.f32.mrb[77].mxu1  ;;  %v5035_v63 = vpop.f32.mrb[78].mxu0  ;;  %4399 = vmax.xlane.f32.xlu1 %v7744_v40 }
 0x3ec   :  { %v5098_v3 = vadd.f32 %v5097_v62, %v5096_v57  ;;  %v5099_v37 = vpop.f32.mrb[78].mxu1  ;;  %v5036_v21 = vpop.f32.mrb[79].mxu0 }
 0x3ed   :  { %v4254_v10 = vadd.f32 %v5034_v61, %v7721_v30  ;;  %v5037_v55 = vadd.f32 %v5036_v21, %v5035_v63  ;;  %v5100_v12 = vpop.f32.mrb[79].mxu1 }
 0x3ee   :  { %v5101_v14 = vadd.f32 %v5100_v12, %v5099_v37 }
 0x3ef   :  { %v4257_v15 = vadd.f32 %v5037_v55, %v7721_v30  ;;  %v7749_v16 = vadd.f32 %v5098_v3, %v4254_v10 }
 0x3f1   :  { %v5038_v58 = vpop.f32.mrb[80].mxu0  ;;  %4401 = vmax.xlane.f32.xlu0 %v7749_v16  ;;  %v7752_v28 = vadd.f32 %v5101_v14, %v4257_v15 }
 0x3f2   :  { %v5102_v17 = vpop.f32.mrb[80].mxu1  ;;  %v5039_v18 = vpop.f32.mrb[81].mxu0 }
 0x3f3   :  { %v5040_v59 = vadd.f32 %v5039_v18, %v5038_v58  ;;  %v5103_v19 = vpop.f32.mrb[81].mxu1  ;;  %v5041_v20 = vpop.f32.mrb[82].mxu0  ;;  %4403 = vmax.xlane.f32.xlu1 %v7752_v28 }
 0x3f4   :  { %v5104_v22 = vadd.f32 %v5103_v19, %v5102_v17  ;;  %v5105_v23 = vpop.f32.mrb[82].mxu1  ;;  %v5042_v24 = vpop.f32.mrb[83].mxu0 }
 0x3f5   :  { %v4262_v25 = vadd.f32 %v5040_v59, %v7721_v30  ;;  %v5043_v56 = vadd.f32 %v5042_v24, %v5041_v20  ;;  %v5106_v44 = vpop.f32.mrb[83].mxu1 }
 0x3f6   :  { %v5107_v27 = vadd.f32 %v5106_v44, %v5105_v23 }
 0x3f7   :  { %v4265_v26 = vadd.f32 %v5043_v56, %v7721_v30  ;;  %v7757_v11 = vadd.f32 %v5104_v22, %v4262_v25 }
 0x3f9   :  { %v5044_v13 = vpop.f32.mrb[84].mxu0  ;;  %4405 = vmax.xlane.f32.xlu0 %v7757_v11  ;;  %v7760_v31 = vadd.f32 %v5107_v27, %v4265_v26 }
 0x3fa   :  { %v5108_v6 = vpop.f32.mrb[84].mxu1  ;;  %v5045_v7 = vpop.f32.mrb[85].mxu0 }
 0x3fb   :  { %v5046_v32 = vadd.f32 %v5045_v7, %v5044_v13  ;;  %v5109_v1 = vpop.f32.mrb[85].mxu1  ;;  %v5047_v33 = vpop.f32.mrb[86].mxu0  ;;  %4407 = vmax.xlane.f32.xlu1 %v7760_v31 }
 0x3fc   :  { %v5110_v34 = vadd.f32 %v5109_v1, %v5108_v6  ;;  %v5111_v2 = vpop.f32.mrb[86].mxu1  ;;  %v5048_v8 = vpop.f32.mrb[87].mxu0 }
 0x3fd   :  { %v4270_v4 = vadd.f32 %v5046_v32, %v7721_v30  ;;  %v5049_v9 = vadd.f32 %v5048_v8, %v5047_v33  ;;  %v5112_v0 = vpop.f32.mrb[87].mxu1 }
 0x3fe   :  { %v5113_v36 = vadd.f32 %v5112_v0, %v5111_v2 }
 0x3ff   :  { %v4273_v38 = vadd.f32 %v5049_v9, %v7721_v30  ;;  %v7765_v39 = vadd.f32 %v5110_v34, %v4270_v4 }
 0x401   :  { %v5050_v42 = vpop.f32.mrb[88].mxu0  ;;  %4409 = vmax.xlane.f32.xlu0 %v7765_v39  ;;  %v7768_v43 = vadd.f32 %v5113_v36, %v4273_v38 }
 0x402   :  { %v5114_v45 = vpop.f32.mrb[88].mxu1  ;;  %v5051_v46 = vpop.f32.mrb[89].mxu0 }
 0x403   :  { %v5052_v47 = vadd.f32 %v5051_v46, %v5050_v42  ;;  %v5115_v48 = vpop.f32.mrb[89].mxu1  ;;  %v5053_v49 = vpop.f32.mrb[90].mxu0  ;;  %4411 = vmax.xlane.f32.xlu1 %v7768_v43 }
 0x404   :  { %v5116_v50 = vadd.f32 %v5115_v48, %v5114_v45  ;;  %v5117_v51 = vpop.f32.mrb[90].mxu1  ;;  %v5054_v52 = vpop.f32.mrb[91].mxu0 }
 0x405   :  { %v4278_v54 = vadd.f32 %v5052_v47, %v7721_v30  ;;  %v5055_v57 = vadd.f32 %v5054_v52, %v5053_v49  ;;  %v5118_v60 = vpop.f32.mrb[91].mxu1 }
 0x406   :  { %v5119_v61 = vadd.f32 %v5118_v60, %v5117_v51 }
 0x407   :  { %v4281_v62 = vadd.f32 %v5055_v57, %v7721_v30  ;;  %v7773_v63 = vadd.f32 %v5116_v50, %v4278_v54 }
 0x409   :  { %v5056_v3 = vpop.f32.mrb[92].mxu0  ;;  %4413 = vmax.xlane.f32.xlu0 %v7773_v63  ;;  %v7776_v37 = vadd.f32 %v5119_v61, %v4281_v62 }
 0x40a   :  { %v5120_v21 = vpop.f32.mrb[92].mxu1  ;;  %v5057_v10 = vpop.f32.mrb[93].mxu0 }
 0x40b   :  { %v5058_v55 = vadd.f32 %v5057_v10, %v5056_v3  ;;  %v5121_v12 = vpop.f32.mrb[93].mxu1  ;;  %v5059_v14 = vpop.f32.mrb[94].mxu0  ;;  %4415 = vmax.xlane.f32.xlu1 %v7776_v37 }
 0x40c   :  { %v5122_v15 = vadd.f32 %v5121_v12, %v5120_v21  ;;  %v5123_v58 = vpop.f32.mrb[94].mxu1  ;;  %v5060_v17 = vpop.f32.mrb[95].mxu0 }
 0x40d   :  { %v4286_v18 = vadd.f32 %v5058_v55, %v7721_v30  ;;  %v5061_v59 = vadd.f32 %v5060_v17, %v5059_v14  ;;  %v5124_v19 = vpop.f32.mrb[95].mxu1 }
 0x40e   :  { %v5125_v20 = vadd.f32 %v5124_v19, %v5123_v58 }
 0x40f   :  { %v4289_v22 = vadd.f32 %v5061_v59, %v7721_v30  ;;  %v7781_v23 = vadd.f32 %v5122_v15, %v4286_v18 }
 0x411   :  { %4417 = vmax.xlane.f32.xlu0 %v7781_v23  ;;  %v7784_v24 = vadd.f32 %v5125_v20, %v4289_v22 }
 0x413   :  { %4419 = vmax.xlane.f32.xlu1 %v7784_v24 }
 0x466   :  { %v4390_v25 = vpop.xlane.xlu0 %4389 }
 0x467   :  { %v7788_v56 = vsub.f32 %v7725_v41, %v4390_v25 }
 0x469   :  { %v4437_v44 = vmul.f32 1.442695, %v7788_v56 }
 0x46a   :  { %v4392_v27 = vpop.xlane.xlu0 %4391 }
 0x46b   :  { %6109 = vpow2.f32 %v4437_v44  ;;  %v7792_v26 = vsub.f32 %v7728_v29, %v4392_v27 }
 0x46d   :  { %v4439_v30 = vmul.f32 1.442695, %v7792_v26 }
 0x46e   :  { %v4394_v13 = vpop.xlane.xlu1 %4393 }
 0x46f   :  { %6111 = vpow2.f32 %v4439_v30  ;;  %v7796_v6 = vsub.f32 %v7733_v35, %v4394_v13 }
 0x471   :  { %v4441_v7 = vmul.f32 1.442695, %v7796_v6 }
 0x472   :  { %v4396_v32 = vpop.xlane.xlu1 %4395 }
 0x473   :  { %6113 = vpow2.f32 %v4441_v7  ;;  %v7800_v41 = vsub.f32 %v7736_v5, %v4396_v32 }
 0x475   :  { %v6110_v1 = vpop.eup %6109  ;;  %v4443_v33 = vmul.f32 1.442695, %v7800_v41 }
 0x476   :  { %4469 = vadd.xlane.f32.xlu0 %v6110_v1  ;;  %v4398_v29 = vpop.xlane.xlu0 %4397 }
 0x477   :  { %6115 = vpow2.f32 %v4443_v33  ;;  %v7804_v34 = vsub.f32 %v7741_v53, %v4398_v29 }
 0x478   :  { %v4400_v2 = vpop.xlane.xlu1 %4399 }
 0x479   :  { %v6112_v8 = vpop.eup %6111  ;;  %v4445_v35 = vmul.f32 1.442695, %v7804_v34  ;;  %v7808_v4 = vsub.f32 %v7744_v40, %v4400_v2 }
 0x47a   :  { %4471 = vadd.xlane.f32.xlu1 %v6112_v8 }
 0x47b   :  { %6117 = vpow2.f32 %v4445_v35  ;;  %v4447_v5 = vmul.f32 1.442695, %v7808_v4 }
 0x47d   :  { %v6114_v9 = vpop.eup %6113  ;;  %6119 = vpow2.f32 %v4447_v5 }
 0x47e   :  { %4473 = vadd.xlane.f32.xlu0 %v6114_v9  ;;  %v4402_v0 = vpop.xlane.xlu0 %4401 }
 0x47f   :  { %v7812_v36 = vsub.f32 %v7749_v16, %v4402_v0 }
 0x480   :  { %v4404_v53 = vpop.xlane.xlu1 %4403 }
 0x481   :  { %v6116_v38 = vpop.eup %6115  ;;  %v4449_v42 = vmul.f32 1.442695, %v7812_v36  ;;  %v7816_v45 = vsub.f32 %v7752_v28, %v4404_v53 }
 0x482   :  { %4475 = vadd.xlane.f32.xlu1 %v6116_v38 }
 0x483   :  { %6121 = vpow2.f32 %v4449_v42  ;;  %v4451_v40 = vmul.f32 1.442695, %v7816_v45 }
 0x485   :  { %v6118_v46 = vpop.eup %6117  ;;  %6123 = vpow2.f32 %v4451_v40 }
 0x486   :  { %4477 = vadd.xlane.f32.xlu0 %v6118_v46  ;;  %v4406_v47 = vpop.xlane.xlu0 %4405 }
 0x487   :  { %v6120_v48 = vpop.eup %6119  ;;  %v7820_v49 = vsub.f32 %v7757_v11, %v4406_v47 }
 0x488   :  { %v4408_v16 = vpop.xlane.xlu1 %4407  ;;  %4479 = vadd.xlane.f32.xlu1 %v6120_v48 }
 0x489   :  { %v4453_v50 = vmul.f32 1.442695, %v7820_v49  ;;  %v7824_v51 = vsub.f32 %v7760_v31, %v4408_v16 }
 0x48b   :  { %6125 = vpow2.f32 %v4453_v50  ;;  %v4455_v28 = vmul.f32 1.442695, %v7824_v51 }
 0x48d   :  { %v6122_v52 = vpop.eup %6121  ;;  %6127 = vpow2.f32 %v4455_v28 }
 0x48e   :  { %4481 = vadd.xlane.f32.xlu0 %v6122_v52  ;;  %v4410_v54 = vpop.xlane.xlu0 %4409 }
 0x48f   :  { %v6124_v57 = vpop.eup %6123  ;;  %v7828_v60 = vsub.f32 %v7765_v39, %v4410_v54 }
 0x490   :  { %v4412_v11 = vpop.xlane.xlu1 %4411  ;;  %4483 = vadd.xlane.f32.xlu1 %v6124_v57 }
 0x491   :  { %v4457_v61 = vmul.f32 1.442695, %v7828_v60  ;;  %v7832_v62 = vsub.f32 %v7768_v43, %v4412_v11 }
 0x493   :  { %6129 = vpow2.f32 %v4457_v61  ;;  %v4459_v31 = vmul.f32 1.442695, %v7832_v62 }
 0x495   :  { %v6126_v3 = vpop.eup %6125  ;;  %6131 = vpow2.f32 %v4459_v31 }
 0x496   :  { %4485 = vadd.xlane.f32.xlu0 %v6126_v3  ;;  %v4414_v21 = vpop.xlane.xlu0 %4413 }
 0x497   :  { %v6128_v10 = vpop.eup %6127  ;;  %v7836_v55 = vsub.f32 %v7773_v63, %v4414_v21 }
 0x498   :  { %v4416_v39 = vpop.xlane.xlu1 %4415  ;;  %4487 = vadd.xlane.f32.xlu1 %v6128_v10 }
 0x499   :  { %v4461_v12 = vmul.f32 1.442695, %v7836_v55  ;;  %v7840_v14 = vsub.f32 %v7776_v37, %v4416_v39 }
 0x49b   :  { %6133 = vpow2.f32 %v4461_v12  ;;  %v4463_v43 = vmul.f32 1.442695, %v7840_v14 }
 0x49d   :  { %v6130_v15 = vpop.eup %6129  ;;  %6135 = vpow2.f32 %v4463_v43 }
 0x49e   :  { %4489 = vadd.xlane.f32.xlu0 %v6130_v15  ;;  %v4418_v58 = vpop.xlane.xlu0 %4417 }
 0x49f   :  { %v6132_v17 = vpop.eup %6131  ;;  %v7844_v18 = vsub.f32 %v7781_v23, %v4418_v58 }
 0x4a0   :  { %v4420_v63 = vpop.xlane.xlu1 %4419  ;;  %4491 = vadd.xlane.f32.xlu1 %v6132_v17 }
 0x4a1   :  { %v4465_v59 = vmul.f32 1.442695, %v7844_v18  ;;  %v7848_v19 = vsub.f32 %v7784_v24, %v4420_v63 }
 0x4a3   :  { %6137 = vpow2.f32 %v4465_v59  ;;  %v4467_v37 = vmul.f32 1.442695, %v7848_v19 }
 0x4a5   :  { %v6134_v20 = vpop.eup %6133  ;;  %6139 = vpow2.f32 %v4467_v37 }
 0x4a6   :  { %4493 = vadd.xlane.f32.xlu0 %v6134_v20 }
 0x4a7   :  { %v6136_v22 = vpop.eup %6135 }
 0x4a8   :  { %4495 = vadd.xlane.f32.xlu1 %v6136_v22 }
 0x4ad   :  { %v6138_v25 = vpop.eup %6137 }
 0x4ae   :  { %4497 = vadd.xlane.f32.xlu0 %v6138_v25 }
 0x4af   :  { %v6140_v44 = vpop.eup %6139 }
 0x4b0   :  { %4499 = vadd.xlane.f32.xlu1 %v6140_v44 }
 0x503   :  { %v4470_v23 = vpop.xlane.xlu0 %4469 }
 0x504   :  { %6141 = vlog2.f32 %v4470_v23 }
 0x507   :  { %v4472_v27 = vpop.xlane.xlu1 %4471 }
 0x508   :  { %6143 = vlog2.f32 %v4472_v27 }
 0x50b   :  { %v4474_v30 = vpop.xlane.xlu0 %4473 }
 0x50c   :  { %6145 = vlog2.f32 %v4474_v30 }
 0x50e   :  { %v6142_v24 = vpop.eup %6141 }
 0x50f   :  { %v4502_v13 = vmul.f32 0.6931472, %v6142_v24  ;;  %v4476_v7 = vpop.xlane.xlu1 %4475 }
 0x510   :  { %6147 = vlog2.f32 %v4476_v7 }
 0x511   :  { %v4533_v32 = vsub.f32 %v7788_v56, %v4502_v13 }
 0x512   :  { %v6144_v1 = vpop.eup %6143 }
 0x513   :  { %4549 = vst [vmem:[%s7922_s7] sm:$0xff] %v4533_v32  ;;  %v4504_v33 = vmul.f32 0.6931472, %v6144_v1  ;;  %v4478_v29 = vpop.xlane.xlu0 %4477 }
 0x514   :  { %6149 = vlog2.f32 %v4478_v29 }
 0x515   :  { %v4534_v2 = vsub.f32 %v7792_v26, %v4504_v33  ;;  %v4480_v8 = vpop.xlane.xlu1 %4479 }
 0x516   :  { %v6146_v35 = vpop.eup %6145  ;;  %6151 = vlog2.f32 %v4480_v8 }
 0x517   :  { %4550 = vst [vmem:[%s7922_s7 + $0x8] sm:$0xff] %v4534_v2  ;;  %v4506_v5 = vmul.f32 0.6931472, %v6146_v35 }
 0x519   :  { %v4535_v56 = vsub.f32 %v7796_v6, %v4506_v5 }
 0x51a   :  { %v6148_v9 = vpop.eup %6147 }
 0x51b   :  { %4551 = vst [vmem:[%s7922_s7 + $0x10] sm:$0xff] %v4535_v56  ;;  %v4508_v0 = vmul.f32 0.6931472, %v6148_v9  ;;  %v4482_v53 = vpop.xlane.xlu0 %4481 }
 0x51c   :  { %6153 = vlog2.f32 %v4482_v53 }
 0x51d   :  { %v4536_v26 = vsub.f32 %v7800_v41, %v4508_v0  ;;  %v4484_v38 = vpop.xlane.xlu1 %4483 }
 0x51e   :  { %v6150_v42 = vpop.eup %6149  ;;  %6155 = vlog2.f32 %v4484_v38 }
 0x51f   :  { %4552 = vst [vmem:[%s7922_s7 + $0x18] sm:$0xff] %v4536_v26  ;;  %v4510_v40 = vmul.f32 0.6931472, %v6150_v42 }
 0x520   :  { %v6152_v46 = vpop.eup %6151 }
 0x521   :  { %v4537_v6 = vsub.f32 %v7804_v34, %v4510_v40  ;;  %v4512_v47 = vmul.f32 0.6931472, %v6152_v46 }
 0x523   :  { %4553 = vst [vmem:[%s7922_s7 + $0x20] sm:$0xff] %v4537_v6  ;;  %v4538_v48 = vsub.f32 %v7808_v4, %v4512_v47  ;;  %v4486_v16 = vpop.xlane.xlu0 %4485 }
 0x524   :  { %6157 = vlog2.f32 %v4486_v16 }
 0x525   :  { %4554 = vst [vmem:[%s7922_s7 + $0x28] sm:$0xff] %v4538_v48  ;;  %v4488_v41 = vpop.xlane.xlu1 %4487 }
 0x526   :  { %v6154_v50 = vpop.eup %6153  ;;  %6159 = vlog2.f32 %v4488_v41 }
 0x527   :  { %v4514_v28 = vmul.f32 0.6931472, %v6154_v50 }
 0x528   :  { %v6156_v52 = vpop.eup %6155 }
 0x529   :  { %v4539_v34 = vsub.f32 %v7812_v36, %v4514_v28  ;;  %v4516_v54 = vmul.f32 0.6931472, %v6156_v52 }
 0x52b   :  { %4555 = vst [vmem:[%s7922_s7 + $0x30] sm:$0xff] %v4539_v34  ;;  %v4540_v4 = vsub.f32 %v7816_v45, %v4516_v54  ;;  %v4490_v57 = vpop.xlane.xlu0 %4489 }
 0x52c   :  { %6161 = vlog2.f32 %v4490_v57 }
 0x52d   :  { %4556 = vst [vmem:[%s7922_s7 + $0x38] sm:$0xff] %v4540_v4  ;;  %v4492_v11 = vpop.xlane.xlu1 %4491 }
 0x52e   :  { %v6158_v61 = vpop.eup %6157  ;;  %6163 = vlog2.f32 %v4492_v11 }
 0x52f   :  { %v4518_v31 = vmul.f32 0.6931472, %v6158_v61 }
 0x530   :  { %v6160_v3 = vpop.eup %6159 }
 0x531   :  { %v4541_v36 = vsub.f32 %v7820_v49, %v4518_v31  ;;  %v4520_v21 = vmul.f32 0.6931472, %v6160_v3 }
 0x533   :  { %4557 = vst [vmem:[%s7922_s7 + $0x40] sm:$0xff] %v4541_v36  ;;  %v4542_v45 = vsub.f32 %v7824_v51, %v4520_v21  ;;  %v4494_v10 = vpop.xlane.xlu0 %4493 }
 0x534   :  { %6165 = vlog2.f32 %v4494_v10 }
 0x535   :  { %4558 = vst [vmem:[%s7922_s7 + $0x48] sm:$0xff] %v4542_v45  ;;  %v4496_v39 = vpop.xlane.xlu1 %4495 }
 0x536   :  { %v6162_v12 = vpop.eup %6161  ;;  %6167 = vlog2.f32 %v4496_v39 }
 0x537   :  { %v4522_v43 = vmul.f32 0.6931472, %v6162_v12 }
 0x538   :  { %v6164_v15 = vpop.eup %6163 }
 0x539   :  { %v4543_v49 = vsub.f32 %v7828_v60, %v4522_v43  ;;  %v4524_v58 = vmul.f32 0.6931472, %v6164_v15 }
 0x53b   :  { %4559 = vst [vmem:[%s7922_s7 + $0x50] sm:$0xff] %v4543_v49  ;;  %v4544_v51 = vsub.f32 %v7832_v62, %v4524_v58  ;;  %v4498_v17 = vpop.xlane.xlu0 %4497 }
 0x53c   :  { %6169 = vlog2.f32 %v4498_v17 }
 0x53d   :  { %4560 = vst [vmem:[%s7922_s7 + $0x58] sm:$0xff] %v4544_v51  ;;  %v4500_v63 = vpop.xlane.xlu1 %4499 }
 0x53e   :  { %v6166_v59 = vpop.eup %6165  ;;  %6171 = vlog2.f32 %v4500_v63 }
 0x53f   :  { %v4526_v37 = vmul.f32 0.6931472, %v6166_v59 }
 0x540   :  { %v6168_v20 = vpop.eup %6167 }
 0x541   :  { %v4545_v60 = vsub.f32 %v7836_v55, %v4526_v37  ;;  %v4528_v22 = vmul.f32 0.6931472, %v6168_v20 }
 0x543   :  { %4561 = vst [vmem:[%s7922_s7 + $0x60] sm:$0xff] %v4545_v60  ;;  %v4546_v62 = vsub.f32 %v7840_v14, %v4528_v22 }
 0x545   :  { %4562 = vst [vmem:[%s7922_s7 + $0x68] sm:$0xff] %v4546_v62 }
 0x546   :  { %v6170_v25 = vpop.eup %6169 }
 0x547   :  { %v4530_v44 = vmul.f32 0.6931472, %v6170_v25 }
 0x548   :  { %v6172_v23 = vpop.eup %6171 }
 0x549   :  { %v4547_v27 = vsub.f32 %v7844_v18, %v4530_v44  ;;  %v4532_v30 = vmul.f32 0.6931472, %v6172_v23 }
 0x54b   :  { %4563 = vst [vmem:[%s7922_s7 + $0x70] sm:$0xff] %v4547_v27  ;;  %v4548_v55 = vsub.f32 %v7848_v19, %v4532_v30 }
 0x54d   :  { %4564 = vst [vmem:[%s7922_s7 + $0x78] sm:$0xff] %v4548_v55 }

</bundles_post_ra>
